<compile_context>
chip_gen: v5e
topology: v5e:2x2
jax: 0.10.0
libtpu: 0.0.40
codegen_flags: <defaults>
</compile_context>

<pallas_src>
import jax
import jax.numpy as jnp
import numpy as np
from jax.experimental import pallas as pl
from jax.experimental.pallas import tpu as pltpu


# ----------------------------------------------------------------------------
# Pallas kernel.
#   xm_ref  : (1, TH, W, Cin)   main rows of this row-tile            (bf16)
#   xt_ref  : (1, 1,  W, Cin)   top halo row (clamped index)          (bf16)
#   xb_ref  : (1, 1,  W, Cin)   bottom halo row (clamped index)       (bf16)
#   w_ref   : (3, 3, Cin, Cp)   fused dense weight, Cp = roundup(Cout,128)
#   b_ref   : (1, Cp)           fused bias (f32)
#   o_ref   : (1, TH, W, Cp)    output tile
#   xpad_ref: (TH+2, W+2, Cin)  VMEM staging buffer (zero-padded tile)
#   acc_ref : (TH*W, Cp)        f32 accumulator
# ----------------------------------------------------------------------------
def hconv_kernel(xm_ref, xt_ref, xb_ref, w_ref, b_ref, o_ref, xpad_ref, acc_ref):
    t = pl.program_id(1)
    num_t = pl.num_programs(1)
    TH = xm_ref.shape[1]
    W = xm_ref.shape[2]
    Cin = xm_ref.shape[3]
    Cp = w_ref.shape[3]

    # ---- Stage the (TH+2, W+2, Cin) zero-padded input tile in VMEM ---------
    # Border columns and out-of-image halo rows stay zero (replaces jnp.pad).
    xpad_ref[...] = jnp.zeros_like(xpad_ref)
    xpad_ref[1:TH + 1, 1:W + 1, :] = xm_ref[0]

    @pl.when(t > 0)                       # top halo row = image row t*TH - 1
    def _():
        xpad_ref[0:1, 1:W + 1, :] = xt_ref[0]

    @pl.when(t < num_t - 1)               # bottom halo row = image row (t+1)*TH
    def _():
        xpad_ref[TH + 1:TH + 2, 1:W + 1, :] = xb_ref[0]

    # ---- f32 accumulator initialised with the fused bias -------------------
    acc_ref[...] = jnp.broadcast_to(b_ref[...], (TH * W, Cp))

    # Stage the three width-shifted views once per tile (the remaining per-tap
    # slice is along the row axis only, a cheap non-minor-dim slice).
    x_w = [xpad_ref[:, dw:dw + W, :] for dw in range(3)]    # each (TH+2, W, Cin)

    # ---- 3x3 conv = 9 (TH*W, Cin) @ (Cin, Cp) MXU matmuls -------------------
    for dh in range(3):
        for dw in range(3):
            xs = x_w[dw][dh:dh + TH].reshape(TH * W, Cin)
            acc_ref[...] += jnp.dot(xs, w_ref[dh, dw],
                                    preferred_element_type=jnp.float32)

    # Lane-dense store: last dim Cp is a multiple of 128 (no masked vst).
    o_ref[0] = acc_ref[...].reshape(TH, W, Cp).astype(o_ref.dtype)


# ----------------------------------------------------------------------------
# Wrapper.
# ----------------------------------------------------------------------------
def _round_up(x, m):
    return (x + m - 1) // m * m


def _choose_row_tile(h, requested=None, target_rows=64):
    """Pick a row tile TH that divides H.  target_rows keeps the double-buffered
    bf16 input tile + f32 accumulator to a few MiB for HFSNet-like widths, which
    also fits comfortably inside v7x's smaller (64 MiB) VMEM."""
    if requested is not None:
        if h % requested != 0:
            raise ValueError(f"row_tile={requested} must divide H={h}")
        return requested
    cands = [th for th in range(8, min(h, target_rows) + 1, 8) if h % th == 0]
    return max(cands) if cands else h


def hconv_pallas(x_nchw, w_dense, bias, *, row_tile=None,
                 compute_dtype=jnp.bfloat16, interpret=False):
    """x_nchw: (N, Cin, H, W).  w_dense: (3, 3, Cin, Cout) fused weight.
    bias: (Cout,) fused bias.  Returns (N, Cout, H, W) in x_nchw.dtype."""
    N, Cin, H, W = x_nchw.shape
    Cout = w_dense.shape[-1]
    out_dtype = x_nchw.dtype

    TH = _choose_row_tile(H, row_tile)
    T = H // TH
    Cp = _round_up(Cout, 128)                 # lane-dense output channels

    # Layout / dtype plumbing (single XLA pass each); see TODO(synk) above.
    x_nhwc = jnp.transpose(x_nchw, (0, 2, 3, 1)).astype(compute_dtype)
    w_p = jnp.zeros((3, 3, Cin, Cp), compute_dtype)
    w_p = w_p.at[..., :Cout].set(w_dense.astype(compute_dtype))
    b_p = jnp.zeros((1, Cp), jnp.float32).at[0, :Cout].set(bias.astype(jnp.float32))

    isz = lambda dt: jnp.dtype(dt).itemsize
    cost = pl.CostEstimate(
        flops=2 * N * H * W * Cin * Cp * 9,
        transcendentals=0,
        bytes_accessed=(x_nhwc.size * isz(compute_dtype)
                        + w_p.size * isz(compute_dtype)
                        + N * H * W * Cp * isz(out_dtype)))

    out = pl.pallas_call(
        hconv_kernel,
        out_shape=jax.ShapeDtypeStruct((N, H, W, Cp), out_dtype),
        grid_spec=pltpu.PrefetchScalarGridSpec(
            num_scalar_prefetch=0,
            grid=(N, T),
            in_specs=[
                # main TH rows of this tile
                pl.BlockSpec((1, TH, W, Cin), lambda n, t: (n, t, 0, 0)),
                # 1-row top halo (image row t*TH - 1, clamped; zeroed at t==0)
                pl.BlockSpec((1, 1, W, Cin),
                             lambda n, t: (n, jnp.maximum(t * TH - 1, 0), 0, 0)),
                # 1-row bottom halo (image row (t+1)*TH, clamped; zeroed at t==T-1)
                pl.BlockSpec((1, 1, W, Cin),
                             lambda n, t: (n, jnp.minimum((t + 1) * TH, H - 1), 0, 0)),
                # fused dense weight + bias (resident across the grid)
                pl.BlockSpec((3, 3, Cin, Cp), lambda n, t: (0, 0, 0, 0)),
                pl.BlockSpec((1, Cp), lambda n, t: (0, 0)),
            ],
            out_specs=pl.BlockSpec((1, TH, W, Cp), lambda n, t: (n, t, 0, 0)),
            scratch_shapes=[
                pltpu.VMEM((TH + 2, W + 2, Cin), compute_dtype),  # padded tile
                pltpu.VMEM((TH * W, Cp), jnp.float32),            # accumulator
            ],
        ),
        compiler_params=pltpu.CompilerParams(
            dimension_semantics=("parallel", "parallel")),
        cost_estimate=cost,
        interpret=interpret,
    )(x_nhwc, x_nhwc, x_nhwc, w_p, b_p)

    # Drop the lane padding and return to NCHW (fuses into one XLA pass).
    return jnp.transpose(out[..., :Cout], (0, 3, 1, 2))


# ----------------------------------------------------------------------------
# Parameter construction and grouped -> dense weight fusion.
# ----------------------------------------------------------------------------
def expand_grouped(w_oihw, groups, c_in, c_out):
    """(Cout, Cin//g, kh, kw) grouped weight -> dense (kh, kw, Cin, Cout)."""
    kh, kw = w_oihw.shape[2], w_oihw.shape[3]
    cin_g, cout_g = c_in // groups, c_out // groups
    dense = jnp.zeros((kh, kw, c_in, c_out), w_oihw.dtype)
    for gi in range(groups):
        blk = w_oihw[gi * cout_g:(gi + 1) * cout_g]          # (cout_g, cin_g, kh, kw)
        blk = jnp.transpose(blk, (2, 3, 1, 0))               # (kh, kw, cin_g, cout_g)
        dense = dense.at[:, :,
                         gi * cin_g:(gi + 1) * cin_g,
                         gi * cout_g:(gi + 1) * cout_g].set(blk)
    return dense


def make_params(key, c_in, c_out, g, p1, p2, dtype=jnp.float32):
    ks = jax.random.split(key, 6)
    scale = 0.1
    w3 = scale * jax.random.normal(ks[0], (c_out, c_in // g, 3, 3), dtype)
    b3 = scale * jax.random.normal(ks[1], (c_out,), dtype)
    w1a = scale * jax.random.normal(ks[2], (c_out, c_in // p1, 1, 1), dtype)
    b1a = scale * jax.random.normal(ks[3], (c_out,), dtype)
    w1b = scale * jax.random.normal(ks[4], (c_out, c_in // p2, 1, 1), dtype)
    b1b = scale * jax.random.normal(ks[5], (c_out,), dtype)
    return (w3, b3, w1a, b1a, w1b, b1b)


def fuse_params(params, c_in, c_out, g, p1, p2):
    w3, b3, w1a, b1a, w1b, b1b = params
    wd = expand_grouped(w3, g, c_in, c_out)                  # (3, 3, Cin, Cout)
    wd1a = expand_grouped(w1a, p1, c_in, c_out)[0, 0]        # (Cin, Cout)
    wd1b = expand_grouped(w1b, p2, c_in, c_out)[0, 0]        # (Cin, Cout)
    wd = wd.at[1, 1].add(wd1a + wd1b)   # 1x1 convs fold into the centre tap
    bias = b3 + b1a + b1b
    return wd, bias


# ----------------------------------------------------------------------------
# Pure-JAX references.
# ----------------------------------------------------------------------------
def ref_dense_conv(x_nchw, w_hwio, bias):
    y = jax.lax.conv_general_dilated(
        x_nchw, w_hwio, window_strides=(1, 1), padding=[(1, 1), (1, 1)],
        dimension_numbers=("NCHW", "HWIO", "NCHW"))
    return y + bias[None, :, None, None]


def ref_hconv(x_nchw, params, g, p1, p2):
    w3, b3, w1a, b1a, w1b, b1b = params

    def conv(x, w, b, pad, groups):
        y = jax.lax.conv_general_dilated(
            x, w, window_strides=(1, 1), padding=[(pad, pad), (pad, pad)],
            dimension_numbers=("NCHW", "OIHW", "NCHW"),
            feature_group_count=groups)
        return y + b[None, :, None, None]

    return (conv(x_nchw, w3, b3, 1, g)
            + conv(x_nchw, w1a, b1a, 0, p1)
            + conv(x_nchw, w1b, b1b, 0, p2))


if __name__ == "__main__":
    # Small shapes consistent with the module (channels divisible by g, p1, p2).
    N, C_IN, C_OUT, H, W = 2, 8, 8, 16, 16
    G, P1, P2 = 4, 4, 2

    key = jax.random.PRNGKey(0)
    kx, kp = jax.random.split(key)
    x = jax.random.normal(kx, (N, C_IN, H, W), jnp.float32)

    params = make_params(kp, C_IN, C_OUT, G, P1, P2)
    w_dense, bias = fuse_params(params, C_IN, C_OUT, G, P1, P2)

    # (a) The fused dense conv reproduces the three grouped convs (f32, pure JAX).
    fused_ref = ref_dense_conv(x, w_dense, bias)
    grouped_ref = ref_hconv(x, params, G, P1, P2)
    np.testing.assert_allclose(np.asarray(fused_ref), np.asarray(grouped_ref),
                               rtol=1e-5, atol=1e-5)

    # (b) The Pallas kernel (bf16 operands, f32 accumulation) matches the same
    #     bf16-rounded operands evaluated with lax.conv in f32.
    xq = x.astype(jnp.bfloat16).astype(jnp.float32)
    wq = w_dense.astype(jnp.bfloat16).astype(jnp.float32)
    bf16_ref = np.asarray(ref_dense_conv(xq, wq, bias))

    for row_tile in (8, None):          # multi-tile (halo path) and single-tile
        out = hconv_pallas(x, w_dense, bias, row_tile=row_tile)
        out = jax.block_until_ready(out)
        np.testing.assert_allclose(np.asarray(out), bf16_ref,
                                   rtol=1e-4, atol=1e-4)

    print("KERNEL_OK")
</pallas_src>

<mosaic_0001>
module attributes {stable_mosaic.version = 11 : i64} {
  func.func @hconv_kernel(%arg0: i32, %arg1: i32, %arg2: memref<1x8x16x8xbf16, #tpu.memory_space<vmem>>, %arg3: memref<1x1x16x8xbf16, #tpu.memory_space<vmem>>, %arg4: memref<1x1x16x8xbf16, #tpu.memory_space<vmem>>, %arg5: memref<3x3x8x128xbf16, #tpu.memory_space<vmem>>, %arg6: memref<1x128xf32, #tpu.memory_space<vmem>>, %arg7: memref<1x8x16x128xf32, #tpu.memory_space<vmem>>, %arg8: memref<10x18x8xbf16, #tpu.memory_space<vmem>>, %arg9: memref<128x128xf32, #tpu.memory_space<vmem>>) attributes {dimension_semantics = [#tpu.dimension_semantics<parallel>, #tpu.dimension_semantics<parallel>], iteration_bounds = array<i64: 2, 2>, scalar_prefetch = 0 : i64, scratch_operands = 2 : i64, tpu.core_type = #tpu.core_type<tc>, window_params = [{transform_indices = @transform_0, window_bounds = array<i64: 1, 8, 16, 8>}, {transform_indices = @transform_1, window_bounds = array<i64: 1, 1, 16, 8>}, {transform_indices = @transform_2, window_bounds = array<i64: 1, 1, 16, 8>}, {pipeline_mode = #tpu.pipeline_mode<synchronous>, transform_indices = @transform_3, window_bounds = array<i64: 3, 3, 8, 128>}, {pipeline_mode = #tpu.pipeline_mode<synchronous>, transform_indices = @transform_4, window_bounds = array<i64: 1, 128>}, {transform_indices = @transform_5, window_bounds = array<i64: 1, 8, 16, 128>}]} {
    %cst = arith.constant 0.000000e+00 : bf16
    %0 = vector.broadcast %cst : bf16 to vector<10x18x8xbf16>
    %c0 = arith.constant 0 : index
    %c0_0 = arith.constant 0 : index
    %c0_1 = arith.constant 0 : index
    %1 = vector.load %arg8[%c0, %c0_0, %c0_1] : memref<10x18x8xbf16, #tpu.memory_space<vmem>>, vector<10x18x8xbf16>
    tpu.vector_store %arg8[%c0, %c0_0, %c0_1], %0 {strides = array<i32>} : memref<10x18x8xbf16, #tpu.memory_space<vmem>>, vector<10x18x8xbf16>,
    %c0_2 = arith.constant 0 : index
    %c0_3 = arith.constant 0 : index
    %c0_4 = arith.constant 0 : index
    %c0_5 = arith.constant 0 : index
    %2 = vector.load %arg2[%c0_2, %c0_3, %c0_4, %c0_5] : memref<1x8x16x8xbf16, #tpu.memory_space<vmem>>, vector<1x8x16x8xbf16>
    %3 = vector.shape_cast %2 : vector<1x8x16x8xbf16> to vector<8x16x8xbf16>
    %c1 = arith.constant 1 : index
    %c1_6 = arith.constant 1 : index
    %c0_7 = arith.constant 0 : index
    %4 = vector.load %arg8[%c1, %c1_6, %c0_7] : memref<10x18x8xbf16, #tpu.memory_space<vmem>>, vector<8x16x8xbf16>
    tpu.vector_store %arg8[%c1, %c1_6, %c0_7], %3 {strides = array<i32>} : memref<10x18x8xbf16, #tpu.memory_space<vmem>>, vector<8x16x8xbf16>,
    %c0_i32 = arith.constant 0 : i32
    %5 = arith.cmpi sgt, %arg1, %c0_i32 : i32
    %6 = arith.extui %5 : i1 to i32
    %c0_i32_8 = arith.constant 0 : i32
    %7 = arith.cmpi ne, %6, %c0_i32_8 : i32
    scf.if %7 {
      %c0_109 = arith.constant 0 : index
      %c0_110 = arith.constant 0 : index
      %c0_111 = arith.constant 0 : index
      %c0_112 = arith.constant 0 : index
      %95 = vector.load %arg3[%c0_109, %c0_110, %c0_111, %c0_112] : memref<1x1x16x8xbf16, #tpu.memory_space<vmem>>, vector<1x1x16x8xbf16>
      %96 = vector.shape_cast %95 : vector<1x1x16x8xbf16> to vector<1x16x8xbf16>
      %c0_113 = arith.constant 0 : index
      %c1_114 = arith.constant 1 : index
      %c0_115 = arith.constant 0 : index
      %97 = vector.load %arg8[%c0_113, %c1_114, %c0_115] : memref<10x18x8xbf16, #tpu.memory_space<vmem>>, vector<1x16x8xbf16>
      tpu.vector_store %arg8[%c0_113, %c1_114, %c0_115], %96 {strides = array<i32>} : memref<10x18x8xbf16, #tpu.memory_space<vmem>>, vector<1x16x8xbf16>,
    } else {
    }
    %c1_i32 = arith.constant 1 : i32
    %8 = arith.cmpi slt, %arg1, %c1_i32 : i32
    %9 = arith.extui %8 : i1 to i32
    %c0_i32_9 = arith.constant 0 : i32
    %10 = arith.cmpi ne, %9, %c0_i32_9 : i32
    scf.if %10 {
      %c0_109 = arith.constant 0 : index
      %c0_110 = arith.constant 0 : index
      %c0_111 = arith.constant 0 : index
      %c0_112 = arith.constant 0 : index
      %95 = vector.load %arg4[%c0_109, %c0_110, %c0_111, %c0_112] : memref<1x1x16x8xbf16, #tpu.memory_space<vmem>>, vector<1x1x16x8xbf16>
      %96 = vector.shape_cast %95 : vector<1x1x16x8xbf16> to vector<1x16x8xbf16>
      %c9 = arith.constant 9 : index
      %c1_113 = arith.constant 1 : index
      %c0_114 = arith.constant 0 : index
      %97 = vector.load %arg8[%c9, %c1_113, %c0_114] : memref<10x18x8xbf16, #tpu.memory_space<vmem>>, vector<1x16x8xbf16>
      tpu.vector_store %arg8[%c9, %c1_113, %c0_114], %96 {strides = array<i32>} : memref<10x18x8xbf16, #tpu.memory_space<vmem>>, vector<1x16x8xbf16>,
    } else {
    }
    %c0_10 = arith.constant 0 : index
    %c0_11 = arith.constant 0 : index
    %11 = vector.load %arg6[%c0_10, %c0_11] : memref<1x128xf32, #tpu.memory_space<vmem>>, vector<1x128xf32>
    %12 = vector.shape_cast %11 : vector<1x128xf32> to vector<1x128xf32>
    %13 = vector.broadcast %12 : vector<1x128xf32> to vector<128x128xf32>
    %c0_12 = arith.constant 0 : index
    %c0_13 = arith.constant 0 : index
    %14 = vector.load %arg9[%c0_12, %c0_13] : memref<128x128xf32, #tpu.memory_space<vmem>>, vector<128x128xf32>
    tpu.vector_store %arg9[%c0_12, %c0_13], %13 {strides = array<i32>} : memref<128x128xf32, #tpu.memory_space<vmem>>, vector<128x128xf32>,
    %c0_14 = arith.constant 0 : index
    %c0_15 = arith.constant 0 : index
    %c0_16 = arith.constant 0 : index
    %15 = vector.load %arg8[%c0_14, %c0_15, %c0_16] : memref<10x18x8xbf16, #tpu.memory_space<vmem>>, vector<10x16x8xbf16>
    %c0_17 = arith.constant 0 : index
    %c1_18 = arith.constant 1 : index
    %c0_19 = arith.constant 0 : index
    %16 = vector.load %arg8[%c0_17, %c1_18, %c0_19] : memref<10x18x8xbf16, #tpu.memory_space<vmem>>, vector<10x16x8xbf16>
    %c0_20 = arith.constant 0 : index
    %c2 = arith.constant 2 : index
    %c0_21 = arith.constant 0 : index
    %17 = vector.load %arg8[%c0_20, %c2, %c0_21] : memref<10x18x8xbf16, #tpu.memory_space<vmem>>, vector<10x16x8xbf16>
    %18 = vector.extract_strided_slice %15 {offsets = [0, 0, 0], sizes = [8, 16, 8], strides = [1, 1, 1]} : vector<10x16x8xbf16> to vector<8x16x8xbf16>
    %19 = vector.shape_cast %18 : vector<8x16x8xbf16> to vector<128x8xbf16>
    %c0_22 = arith.constant 0 : index
    %c0_23 = arith.constant 0 : index
    %20 = vector.load %arg9[%c0_22, %c0_23] : memref<128x128xf32, #tpu.memory_space<vmem>>, vector<128x128xf32>
    %c0_24 = arith.constant 0 : index
    %c0_25 = arith.constant 0 : index
    %c0_26 = arith.constant 0 : index
    %c0_27 = arith.constant 0 : index
    %21 = vector.load %arg5[%c0_24, %c0_25, %c0_26, %c0_27] : memref<3x3x8x128xbf16, #tpu.memory_space<vmem>>, vector<1x1x8x128xbf16>
    %22 = vector.shape_cast %21 : vector<1x1x8x128xbf16> to vector<8x128xbf16>
    %cst_28 = arith.constant dense<0.000000e+00> : vector<128x128xf32>
    %23 = tpu.matmul %19, %22, %cst_28 {dimension_numbers = #tpu.dot_dimension_numbers<[1], [0], [0], [1], [0, 0, 1, 1], [], []>} : vector<128x8xbf16>, vector<8x128xbf16>, vector<128x128xf32> -> vector<128x128xf32>
    %24 = arith.addf %20, %23 : vector<128x128xf32>
    %c0_29 = arith.constant 0 : index
    %c0_30 = arith.constant 0 : index
    %25 = vector.load %arg9[%c0_29, %c0_30] : memref<128x128xf32, #tpu.memory_space<vmem>>, vector<128x128xf32>
    tpu.vector_store %arg9[%c0_29, %c0_30], %24 {strides = array<i32>} : memref<128x128xf32, #tpu.memory_space<vmem>>, vector<128x128xf32>,
    %26 = vector.extract_strided_slice %16 {offsets = [0, 0, 0], sizes = [8, 16, 8], strides = [1, 1, 1]} : vector<10x16x8xbf16> to vector<8x16x8xbf16>
    %27 = vector.shape_cast %26 : vector<8x16x8xbf16> to vector<128x8xbf16>
    %c0_31 = arith.constant 0 : index
    %c0_32 = arith.constant 0 : index
    %28 = vector.load %arg9[%c0_31, %c0_32] : memref<128x128xf32, #tpu.memory_space<vmem>>, vector<128x128xf32>
    %c0_33 = arith.constant 0 : index
    %c1_34 = arith.constant 1 : index
    %c0_35 = arith.constant 0 : index
    %c0_36 = arith.constant 0 : index
    %29 = vector.load %arg5[%c0_33, %c1_34, %c0_35, %c0_36] : memref<3x3x8x128xbf16, #tpu.memory_space<vmem>>, vector<1x1x8x128xbf16>
    %30 = vector.shape_cast %29 : vector<1x1x8x128xbf16> to vector<8x128xbf16>
    %cst_37 = arith.constant dense<0.000000e+00> : vector<128x128xf32>
    %31 = tpu.matmul %27, %30, %cst_37 {dimension_numbers = #tpu.dot_dimension_numbers<[1], [0], [0], [1], [0, 0, 1, 1], [], []>} : vector<128x8xbf16>, vector<8x128xbf16>, vector<128x128xf32> -> vector<128x128xf32>
    %32 = arith.addf %28, %31 : vector<128x128xf32>
    %c0_38 = arith.constant 0 : index
    %c0_39 = arith.constant 0 : index
    %33 = vector.load %arg9[%c0_38, %c0_39] : memref<128x128xf32, #tpu.memory_space<vmem>>, vector<128x128xf32>
    tpu.vector_store %arg9[%c0_38, %c0_39], %32 {strides = array<i32>} : memref<128x128xf32, #tpu.memory_space<vmem>>, vector<128x128xf32>,
    %34 = vector.extract_strided_slice %17 {offsets = [0, 0, 0], sizes = [8, 16, 8], strides = [1, 1, 1]} : vector<10x16x8xbf16> to vector<8x16x8xbf16>
    %35 = vector.shape_cast %34 : vector<8x16x8xbf16> to vector<128x8xbf16>
    %c0_40 = arith.constant 0 : index
    %c0_41 = arith.constant 0 : index
    %36 = vector.load %arg9[%c0_40, %c0_41] : memref<128x128xf32, #tpu.memory_space<vmem>>, vector<128x128xf32>
    %c0_42 = arith.constant 0 : index
    %c2_43 = arith.constant 2 : index
    %c0_44 = arith.constant 0 : index
    %c0_45 = arith.constant 0 : index
    %37 = vector.load %arg5[%c0_42, %c2_43, %c0_44, %c0_45] : memref<3x3x8x128xbf16, #tpu.memory_space<vmem>>, vector<1x1x8x128xbf16>
    %38 = vector.shape_cast %37 : vector<1x1x8x128xbf16> to vector<8x128xbf16>
    %cst_46 = arith.constant dense<0.000000e+00> : vector<128x128xf32>
    %39 = tpu.matmul %35, %38, %cst_46 {dimension_numbers = #tpu.dot_dimension_numbers<[1], [0], [0], [1], [0, 0, 1, 1], [], []>} : vector<128x8xbf16>, vector<8x128xbf16>, vector<128x128xf32> -> vector<128x128xf32>
    %40 = arith.addf %36, %39 : vector<128x128xf32>
    %c0_47 = arith.constant 0 : index
    %c0_48 = arith.constant 0 : index
    %41 = vector.load %arg9[%c0_47, %c0_48] : memref<128x128xf32, #tpu.memory_space<vmem>>, vector<128x128xf32>
    tpu.vector_store %arg9[%c0_47, %c0_48], %40 {strides = array<i32>} : memref<128x128xf32, #tpu.memory_space<vmem>>, vector<128x128xf32>,
    %42 = vector.extract_strided_slice %15 {offsets = [1, 0, 0], sizes = [8, 16, 8], strides = [1, 1, 1]} : vector<10x16x8xbf16> to vector<8x16x8xbf16>
    %43 = vector.shape_cast %42 : vector<8x16x8xbf16> to vector<128x8xbf16>
    %c0_49 = arith.constant 0 : index
    %c0_50 = arith.constant 0 : index
    %44 = vector.load %arg9[%c0_49, %c0_50] : memref<128x128xf32, #tpu.memory_space<vmem>>, vector<128x128xf32>
    %c1_51 = arith.constant 1 : index
    %c0_52 = arith.constant 0 : index
    %c0_53 = arith.constant 0 : index
    %c0_54 = arith.constant 0 : index
    %45 = vector.load %arg5[%c1_51, %c0_52, %c0_53, %c0_54] : memref<3x3x8x128xbf16, #tpu.memory_space<vmem>>, vector<1x1x8x128xbf16>
    %46 = vector.shape_cast %45 : vector<1x1x8x128xbf16> to vector<8x128xbf16>
    %cst_55 = arith.constant dense<0.000000e+00> : vector<128x128xf32>
    %47 = tpu.matmul %43, %46, %cst_55 {dimension_numbers = #tpu.dot_dimension_numbers<[1], [0], [0], [1], [0, 0, 1, 1], [], []>} : vector<128x8xbf16>, vector<8x128xbf16>, vector<128x128xf32> -> vector<128x128xf32>
    %48 = arith.addf %44, %47 : vector<128x128xf32>
    %c0_56 = arith.constant 0 : index
    %c0_57 = arith.constant 0 : index
    %49 = vector.load %arg9[%c0_56, %c0_57] : memref<128x128xf32, #tpu.memory_space<vmem>>, vector<128x128xf32>
    tpu.vector_store %arg9[%c0_56, %c0_57], %48 {strides = array<i32>} : memref<128x128xf32, #tpu.memory_space<vmem>>, vector<128x128xf32>,
    %50 = vector.extract_strided_slice %16 {offsets = [1, 0, 0], sizes = [8, 16, 8], strides = [1, 1, 1]} : vector<10x16x8xbf16> to vector<8x16x8xbf16>
    %51 = vector.shape_cast %50 : vector<8x16x8xbf16> to vector<128x8xbf16>
    %c0_58 = arith.constant 0 : index
    %c0_59 = arith.constant 0 : index
    %52 = vector.load %arg9[%c0_58, %c0_59] : memref<128x128xf32, #tpu.memory_space<vmem>>, vector<128x128xf32>
    %c1_60 = arith.constant 1 : index
    %c1_61 = arith.constant 1 : index
    %c0_62 = arith.constant 0 : index
    %c0_63 = arith.constant 0 : index
    %53 = vector.load %arg5[%c1_60, %c1_61, %c0_62, %c0_63] : memref<3x3x8x128xbf16, #tpu.memory_space<vmem>>, vector<1x1x8x128xbf16>
    %54 = vector.shape_cast %53 : vector<1x1x8x128xbf16> to vector<8x128xbf16>
    %cst_64 = arith.constant dense<0.000000e+00> : vector<128x128xf32>
    %55 = tpu.matmul %51, %54, %cst_64 {dimension_numbers = #tpu.dot_dimension_numbers<[1], [0], [0], [1], [0, 0, 1, 1], [], []>} : vector<128x8xbf16>, vector<8x128xbf16>, vector<128x128xf32> -> vector<128x128xf32>
    %56 = arith.addf %52, %55 : vector<128x128xf32>
    %c0_65 = arith.constant 0 : index
    %c0_66 = arith.constant 0 : index
    %57 = vector.load %arg9[%c0_65, %c0_66] : memref<128x128xf32, #tpu.memory_space<vmem>>, vector<128x128xf32>
    tpu.vector_store %arg9[%c0_65, %c0_66], %56 {strides = array<i32>} : memref<128x128xf32, #tpu.memory_space<vmem>>, vector<128x128xf32>,
    %58 = vector.extract_strided_slice %17 {offsets = [1, 0, 0], sizes = [8, 16, 8], strides = [1, 1, 1]} : vector<10x16x8xbf16> to vector<8x16x8xbf16>
    %59 = vector.shape_cast %58 : vector<8x16x8xbf16> to vector<128x8xbf16>
    %c0_67 = arith.constant 0 : index
    %c0_68 = arith.constant 0 : index
    %60 = vector.load %arg9[%c0_67, %c0_68] : memref<128x128xf32, #tpu.memory_space<vmem>>, vector<128x128xf32>
    %c1_69 = arith.constant 1 : index
    %c2_70 = arith.constant 2 : index
    %c0_71 = arith.constant 0 : index
    %c0_72 = arith.constant 0 : index
    %61 = vector.load %arg5[%c1_69, %c2_70, %c0_71, %c0_72] : memref<3x3x8x128xbf16, #tpu.memory_space<vmem>>, vector<1x1x8x128xbf16>
    %62 = vector.shape_cast %61 : vector<1x1x8x128xbf16> to vector<8x128xbf16>
    %cst_73 = arith.constant dense<0.000000e+00> : vector<128x128xf32>
    %63 = tpu.matmul %59, %62, %cst_73 {dimension_numbers = #tpu.dot_dimension_numbers<[1], [0], [0], [1], [0, 0, 1, 1], [], []>} : vector<128x8xbf16>, vector<8x128xbf16>, vector<128x128xf32> -> vector<128x128xf32>
    %64 = arith.addf %60, %63 : vector<128x128xf32>
    %c0_74 = arith.constant 0 : index
    %c0_75 = arith.constant 0 : index
    %65 = vector.load %arg9[%c0_74, %c0_75] : memref<128x128xf32, #tpu.memory_space<vmem>>, vector<128x128xf32>
    tpu.vector_store %arg9[%c0_74, %c0_75], %64 {strides = array<i32>} : memref<128x128xf32, #tpu.memory_space<vmem>>, vector<128x128xf32>,
    %66 = vector.extract_strided_slice %15 {offsets = [2, 0, 0], sizes = [8, 16, 8], strides = [1, 1, 1]} : vector<10x16x8xbf16> to vector<8x16x8xbf16>
    %67 = vector.shape_cast %66 : vector<8x16x8xbf16> to vector<128x8xbf16>
    %c0_76 = arith.constant 0 : index
    %c0_77 = arith.constant 0 : index
    %68 = vector.load %arg9[%c0_76, %c0_77] : memref<128x128xf32, #tpu.memory_space<vmem>>, vector<128x128xf32>
    %c2_78 = arith.constant 2 : index
    %c0_79 = arith.constant 0 : index
    %c0_80 = arith.constant 0 : index
    %c0_81 = arith.constant 0 : index
    %69 = vector.load %arg5[%c2_78, %c0_79, %c0_80, %c0_81] : memref<3x3x8x128xbf16, #tpu.memory_space<vmem>>, vector<1x1x8x128xbf16>
    %70 = vector.shape_cast %69 : vector<1x1x8x128xbf16> to vector<8x128xbf16>
    %cst_82 = arith.constant dense<0.000000e+00> : vector<128x128xf32>
    %71 = tpu.matmul %67, %70, %cst_82 {dimension_numbers = #tpu.dot_dimension_numbers<[1], [0], [0], [1], [0, 0, 1, 1], [], []>} : vector<128x8xbf16>, vector<8x128xbf16>, vector<128x128xf32> -> vector<128x128xf32>
    %72 = arith.addf %68, %71 : vector<128x128xf32>
    %c0_83 = arith.constant 0 : index
    %c0_84 = arith.constant 0 : index
    %73 = vector.load %arg9[%c0_83, %c0_84] : memref<128x128xf32, #tpu.memory_space<vmem>>, vector<128x128xf32>
    tpu.vector_store %arg9[%c0_83, %c0_84], %72 {strides = array<i32>} : memref<128x128xf32, #tpu.memory_space<vmem>>, vector<128x128xf32>,
    %74 = vector.extract_strided_slice %16 {offsets = [2, 0, 0], sizes = [8, 16, 8], strides = [1, 1, 1]} : vector<10x16x8xbf16> to vector<8x16x8xbf16>
    %75 = vector.shape_cast %74 : vector<8x16x8xbf16> to vector<128x8xbf16>
    %c0_85 = arith.constant 0 : index
    %c0_86 = arith.constant 0 : index
    %76 = vector.load %arg9[%c0_85, %c0_86] : memref<128x128xf32, #tpu.memory_space<vmem>>, vector<128x128xf32>
    %c2_87 = arith.constant 2 : index
    %c1_88 = arith.constant 1 : index
    %c0_89 = arith.constant 0 : index
    %c0_90 = arith.constant 0 : index
    %77 = vector.load %arg5[%c2_87, %c1_88, %c0_89, %c0_90] : memref<3x3x8x128xbf16, #tpu.memory_space<vmem>>, vector<1x1x8x128xbf16>
    %78 = vector.shape_cast %77 : vector<1x1x8x128xbf16> to vector<8x128xbf16>
    %cst_91 = arith.constant dense<0.000000e+00> : vector<128x128xf32>
    %79 = tpu.matmul %75, %78, %cst_91 {dimension_numbers = #tpu.dot_dimension_numbers<[1], [0], [0], [1], [0, 0, 1, 1], [], []>} : vector<128x8xbf16>, vector<8x128xbf16>, vector<128x128xf32> -> vector<128x128xf32>
    %80 = arith.addf %76, %79 : vector<128x128xf32>
    %c0_92 = arith.constant 0 : index
    %c0_93 = arith.constant 0 : index
    %81 = vector.load %arg9[%c0_92, %c0_93] : memref<128x128xf32, #tpu.memory_space<vmem>>, vector<128x128xf32>
    tpu.vector_store %arg9[%c0_92, %c0_93], %80 {strides = array<i32>} : memref<128x128xf32, #tpu.memory_space<vmem>>, vector<128x128xf32>,
    %82 = vector.extract_strided_slice %17 {offsets = [2, 0, 0], sizes = [8, 16, 8], strides = [1, 1, 1]} : vector<10x16x8xbf16> to vector<8x16x8xbf16>
    %83 = vector.shape_cast %82 : vector<8x16x8xbf16> to vector<128x8xbf16>
    %c0_94 = arith.constant 0 : index
    %c0_95 = arith.constant 0 : index
    %84 = vector.load %arg9[%c0_94, %c0_95] : memref<128x128xf32, #tpu.memory_space<vmem>>, vector<128x128xf32>
    %c2_96 = arith.constant 2 : index
    %c2_97 = arith.constant 2 : index
    %c0_98 = arith.constant 0 : index
    %c0_99 = arith.constant 0 : index
    %85 = vector.load %arg5[%c2_96, %c2_97, %c0_98, %c0_99] : memref<3x3x8x128xbf16, #tpu.memory_space<vmem>>, vector<1x1x8x128xbf16>
    %86 = vector.shape_cast %85 : vector<1x1x8x128xbf16> to vector<8x128xbf16>
    %cst_100 = arith.constant dense<0.000000e+00> : vector<128x128xf32>
    %87 = tpu.matmul %83, %86, %cst_100 {dimension_numbers = #tpu.dot_dimension_numbers<[1], [0], [0], [1], [0, 0, 1, 1], [], []>} : vector<128x8xbf16>, vector<8x128xbf16>, vector<128x128xf32> -> vector<128x128xf32>
    %88 = arith.addf %84, %87 : vector<128x128xf32>
    %c0_101 = arith.constant 0 : index
    %c0_102 = arith.constant 0 : index
    %89 = vector.load %arg9[%c0_101, %c0_102] : memref<128x128xf32, #tpu.memory_space<vmem>>, vector<128x128xf32>
    tpu.vector_store %arg9[%c0_101, %c0_102], %88 {strides = array<i32>} : memref<128x128xf32, #tpu.memory_space<vmem>>, vector<128x128xf32>,
    %c0_103 = arith.constant 0 : index
    %c0_104 = arith.constant 0 : index
    %90 = vector.load %arg9[%c0_103, %c0_104] : memref<128x128xf32, #tpu.memory_space<vmem>>, vector<128x128xf32>
    %91 = vector.shape_cast %90 : vector<128x128xf32> to vector<8x16x128xf32>
    %c0_105 = arith.constant 0 : index
    %c0_106 = arith.constant 0 : index
    %c0_107 = arith.constant 0 : index
    %c0_108 = arith.constant 0 : index
    %92 = vector.load %arg7[%c0_105, %c0_106, %c0_107, %c0_108] : memref<1x8x16x128xf32, #tpu.memory_space<vmem>>, vector<1x8x16x128xf32>
    %93 = vector.shape_cast %92 : vector<1x8x16x128xf32> to vector<8x16x128xf32>
    %94 = vector.shape_cast %91 : vector<8x16x128xf32> to vector<1x8x16x128xf32>
    tpu.vector_store %arg7[%c0_105, %c0_106, %c0_107, %c0_108], %94 {strides = array<i32>} : memref<1x8x16x128xf32, #tpu.memory_space<vmem>>, vector<1x8x16x128xf32>,
    return
  }
  func.func @transform_0(%arg0: i32, %arg1: i32) -> (i32, i32, i32, i32) {
    %c0_i32 = arith.constant 0 : i32
    %c0_i32_0 = arith.constant 0 : i32
    %c0_i32_1 = arith.constant 0 : i32
    return %arg0, %arg1, %c0_i32, %c0_i32_0 : i32, i32, i32, i32
  }
  func.func @transform_1(%arg0: i32, %arg1: i32) -> (i32, i32, i32, i32) {
    %c8_i32 = arith.constant 8 : i32
    %0 = arith.muli %arg1, %c8_i32 : i32
    %c1_i32 = arith.constant 1 : i32
    %1 = arith.subi %0, %c1_i32 : i32
    %c0_i32 = arith.constant 0 : i32
    %2 = arith.maxsi %1, %c0_i32 : i32
    %c0_i32_0 = arith.constant 0 : i32
    %c0_i32_1 = arith.constant 0 : i32
    %c0_i32_2 = arith.constant 0 : i32
    return %arg0, %2, %c0_i32_0, %c0_i32_1 : i32, i32, i32, i32
  }
  func.func @transform_2(%arg0: i32, %arg1: i32) -> (i32, i32, i32, i32) {
    %c1_i32 = arith.constant 1 : i32
    %0 = arith.addi %arg1, %c1_i32 : i32
    %c8_i32 = arith.constant 8 : i32
    %1 = arith.muli %0, %c8_i32 : i32
    %c15_i32 = arith.constant 15 : i32
    %2 = arith.minsi %1, %c15_i32 : i32
    %c0_i32 = arith.constant 0 : i32
    %c0_i32_0 = arith.constant 0 : i32
    %c0_i32_1 = arith.constant 0 : i32
    return %arg0, %2, %c0_i32, %c0_i32_0 : i32, i32, i32, i32
  }
  func.func @transform_3(%arg0: i32, %arg1: i32) -> (i32, i32, i32, i32) {
    %c0_i32 = arith.constant 0 : i32
    %c0_i32_0 = arith.constant 0 : i32
    %c0_i32_1 = arith.constant 0 : i32
    %c0_i32_2 = arith.constant 0 : i32
    %c0_i32_3 = arith.constant 0 : i32
    return %c0_i32, %c0_i32_0, %c0_i32_1, %c0_i32_2 : i32, i32, i32, i32
  }
  func.func @transform_4(%arg0: i32, %arg1: i32) -> (i32, i32) {
    %c0_i32 = arith.constant 0 : i32
    %c0_i32_0 = arith.constant 0 : i32
    %c0_i32_1 = arith.constant 0 : i32
    return %c0_i32, %c0_i32_0 : i32, i32
  }
  func.func @transform_5(%arg0: i32, %arg1: i32) -> (i32, i32, i32, i32) {
    %c0_i32 = arith.constant 0 : i32
    %c0_i32_0 = arith.constant 0 : i32
    %c0_i32_1 = arith.constant 0 : i32
    return %arg0, %arg1, %c0_i32, %c0_i32_0 : i32, i32, i32, i32
  }
}

</mosaic_0001>

<bundles_post_ra>
// kernel: tpu_custom_call.1
= control target key start
LH: loop header
LB: loop body
LE: loop exit
PB: predicated region body
PF: predicated region fallthrough
CT: control target
= control target key end

     0   :  { %s3627_s0 = inlined_call_operand.vmem [shape: bf16[2,16,16,8], index: 0, kind: input, shape index: {}]   ;;  %s3628_s1 = inlined_call_operand.vmem [shape: bf16[2,16,16,8], index: 1, kind: input, shape index: {}]   ;;  %s3629_s2 = inlined_call_operand.vmem [shape: bf16[2,16,16,8], index: 2, kind: input, shape index: {}]   ;;  %s3630_s3 = inlined_call_operand.vmem [shape: bf16[3,3,8,128], index: 3, kind: input, shape index: {}]   ;;  %s3631_s4 = inlined_call_operand.vmem [shape: f32[1,128], index: 4, kind: input, shape index: {}]   ;;  %s3632_s5 = inlined_call_operand.hbm [shape: f32[2,16,16,128], index: 5, kind: output, shape index: {}]  }
   0x1   :  { %3634 = sst [smem:[#allocation7_spill]] %s3627_s0 }
   0x2   :  { %10 = vsyncpa [#allocation5], 0 }
   0x3   :  { %12 = vsyncpa [#allocation5 + $0x1], 0  ;;  %s2813_s18 = smov 0   ;;  %s2815_s19 = smov 0  }
   0x4   :  { %s2817_s20 = smov 0   ;;  %s2819_s21 = smov 0  }
   0x5   :  { %s2821_s22 = smov 0   ;;  %s2823_s23 = smov 0  }
   0x6   :  { %s2825_s24 = smov 0   ;;  %s2827_s25 = smov 0  }
   0x7 LB: > { %s2415_s26 = sadd.s32 4294967295, %s2778_s25   ;;  %s2416_s27 = sadd.s32 4294967294, %s2778_s25   ;;  %s2778_s25 = sphi %s2827_s25, %s18_s25   ;;  %s2774_s24 = sphi %s2825_s24, %s3656_s24   ;;  %s2770_s23 = sphi %s2823_s23, %s3655_s23   ;;  %s2766_s22 = sphi %s2821_s22, %s3654_s22   ;;  %s2762_s21 = sphi %s2819_s21, %s3653_s21   ;;  %s2758_s20 = sphi %s2817_s20, %s3652_s20   ;;  %s2754_s19 = sphi %s2815_s19, %s3651_s19   ;;  %s2750_s18 = sphi %s2813_s18, %s3650_s18  }
   0x8   : > { %s27_s28 = sadd.s32 1, %s2770_s23  ;;  %s30_s29 = sadd.s32 1, %s2774_s24 }
   0x9   : > { %p28_p0 = scmp.ge.s32.totalorder %s27_s28, 2  ;;  %p191_p1 = scmp.ne.s32.totalorder %s2758_s20, %s2754_s19 }
   0xa   : > { %p192_p2 = scmp.eq.s32.totalorder %s2415_s26, 3  ;;  %p197_p5 = scmp.ne.s32.totalorder %s2754_s19, %s2750_s18 }
   0xb   : > { %s3658_s28 = smov (%p28_p0, %s27_s28), 0  ;;  %s3660_s29 = smov (!%p28_p0, %s30_s29), %s2774_s24 }
   0xc   : > { %s177_s30 = ssub.s32 %s2770_s23, %s3658_s28  ;;  %p2864_p3 = por %p192_p2, %p191_p1 }
   0xd   : > { %p32_p4 = scmp.ge.s32.totalorder %s3660_s29, 2  ;;  %p198_p6 = scmp.eq.s32.totalorder %s2416_s27, 3 }
   0xe   : > { %p2425_p7 = scmp.ge.s32.totalorder %s2778_s25, 1  ;;  %p276_p9 = scmp.lt.s32.totalorder %s2778_s25, 5 }
   0xf   : > { %s3662_s29 = smov (%p32_p4, %s3660_s29), 0  ;;  %p2873_p8 = por %p198_p6, %p197_p5 }
  0x10   : > { %s176_s8 = ssub.s32 %s2774_s24, %s3662_s29  ;;  %s181_s9 = sadd.s32 1, %s2758_s20 }
  0x11   : > { %s178_s10 = sor.u32 %s177_s30, %s176_s8  ;;  %p277_p10 = pnand %p2425_p7, %p276_p9 }
  0x12   : > { %p179_p11 = scmp.eq.s32.totalorder %s178_s10, 0  ;;  %s3633_s12 = sand.u32 (!%p277_p10), 1, %s2754_s19  }
  0x13   : > { %280 = sbr.rel (%p277_p10) target bundleno = 535 (0x217), region = 40  ;;  %s2886_s13 = sshll.u32 (!%p277_p10), %s2762_s21, 3 }
  0x14   : > { %s2882_s11 = scalar_select %p179_p11, %s2758_s20, %s181_s9  }
  0x15   : > { %s2892_s14 = sshll.u32 (!%p277_p10), %s3633_s12, 7  ;;  %p336_p12 = scmp.lt.s32.totalorder (!%p277_p10), %s2766_s22, 1 }
  0x16   : > { %p338_p13 = scmp.lt.s32.totalorder (!%p277_p10), %s2886_s13, 15  ;;  %s2432_s26 = sadd.s32 (!%p277_p10), 4294967295, %s2886_s13 }
  0x17   : > { %p348_p0 = scmp.gt.s32.totalorder (!%p277_p10), %s2432_s26, 0  ;;  %p2433_p1 = scmp.lt.s32.totalorder (!%p277_p10), %s2432_s26, 15 }
  0x18   : > { %vm382_vm0 = vcmask 60416   ;;  %v2780_v0 = vmov 0   ;;  %s337_s15 = scalar_select %p336_p12, %s2766_s22, 1  ;;  %vm385_vm1 = vcmask 57344   ;;  %vm595_vm2 = vsmask.f32 7938 }
  0x19   : > { %387 = vst.msk [vmem:[#allocation2 + $0xc] sm:$0xf] %vm382_vm0, %v2780_v0  ;;  %s339_s16 = scalar_select %p338_p13, %s2886_s13, 15  ;;  %vm430_vm3 = vsmask.f32 256  ;;  %vm2985_vm5 = vmand %vm382_vm0, %vm595_vm2 }
  0x1a   : > { %383 = vst.msk [vmem:[#allocation2] sm:$0xf] %vm382_vm0, %v2780_v0  ;;  %s2906_s17 = sshll.u32 %s337_s15, 5  ;;  %s2594_s9 = sadd.s32 8, %s2886_s13  ;;  %vm431_vm4 = vsmask.f32 4368  ;;  %vm3002_vm7 = vmand %vm385_vm1, %vm430_vm3 }
  0x1b   : > { %384 = vst.msk [vmem:[#allocation2 + $0x4] sm:$0xf] %vm382_vm0, %v2780_v0  ;;  %s2428_s27 = sshll.u32 %s339_s16, 1  ;;  %s3637_s0 = sld [smem:[#allocation7_spill]]  ;;  %vm2993_vm6 = vmor %vm430_vm3, %vm431_vm4 }
  0x1c   : > { %388 = vst.msk [vmem:[#allocation2 + $0x10] sm:$0xf] %vm382_vm0, %v2780_v0  ;;  %s342_s30 = sadd.s32 %s2906_s17, %s2428_s27  ;;  %p2924_p2 = scmp.lt.s32.totalorder %s2594_s9, 15 }
  0x1d   : > { %390 = vst.msk [vmem:[#allocation2 + $0x18] sm:$0xf] %vm382_vm0, %v2780_v0  ;;  %s2430_s8 = sshll.u32 %s342_s30, 2  ;;  %s3664_s26 = smov (!%p348_p0, %s2432_s26), 0 }
  0x1e   : > { %391 = vst.msk [vmem:[#allocation2 + $0x1c] sm:$0xf] %vm382_vm0, %v2780_v0  ;;  %s3666_s9 = smov (!%p2924_p2, %s2594_s9), 15  ;;  %s3668_s26 = smov (!%p2433_p1, %s3664_s26), 15 }
  0x1f   : > { %393 = vst.msk [vmem:[#allocation2 + $0x24] sm:$0xf] %vm382_vm0, %v2780_v0  ;;  %s3670_s9 = smov (!%p2924_p2, %s3666_s9), 15  ;;  %s2438_s13 = sshll.u32 %s3668_s26, 1 }
  0x20   : > { %394 = vst.msk [vmem:[#allocation2 + $0x28] sm:$0xf] %vm382_vm0, %v2780_v0  ;;  %s356_s27 = sadd.s32 %s2438_s13, %s2906_s17  ;;  %s2445_s30 = sshll.u32 %s3670_s9, 1  ;;  %v597_v19 = vld [vmem:[#allocation2 + $0xc] sm:$0xf] }
  0x21   : > { %396 = vst.msk [vmem:[#allocation2 + $0x30] sm:$0xf] %vm382_vm0, %v2780_v0  ;;  %s2922_s12 = scalar_lea.vmem %s3637_s0, %s2430_s8  ;;  %s2440_s8 = sshll.u32 %s356_s27, 2 }
  0x22   : > { %397 = vst.msk [vmem:[#allocation2 + $0x34] sm:$0xf] %vm382_vm0, %v2780_v0  ;;  %v414_v1 = vld [vmem:[%s2922_s12] sm:$0xf]  ;;  %v415_v2 = vld [vmem:[%s2922_s12 + $0x4] sm:$0xf]  ;;  %s373_s10 = sadd.s32 %s2445_s30, %s2906_s17  ;;  %s2956_s16 = scalar_lea.vmem %s3628_s1, %s2440_s8 }
  0x23   : > { %399 = vst.msk [vmem:[#allocation2 + $0x3c] sm:$0xf] %vm382_vm0, %v2780_v0  ;;  %v416_v3 = vld [vmem:[%s2922_s12 + $0x8] sm:$0xf]  ;;  %v434_v4 = vshrl.u32 %v414_v1, 16  ;;  %v442_v5 = vshrl.u32 %v415_v2, 16 }
  0x24   : > { %400 = vst.msk [vmem:[#allocation2 + $0x40] sm:$0xf] %vm382_vm0, %v2780_v0  ;;  %s2447_s0 = sshll.u32 %s373_s10, 2  ;;  %v451_v6 = vshrl.u32 %v416_v3, 16  ;;  %v417_v7 = vld [vmem:[%s2922_s12 + $0xc] sm:$0xf] }
  0x25   : > { %402 = vst.msk [vmem:[#allocation2 + $0x48] sm:$0xf] %vm382_vm0, %v2780_v0  ;;  %s2963_s17 = scalar_lea.vmem %s3629_s2, %s2447_s0  ;;  %v418_v8 = vld [vmem:[%s2922_s12 + $0x10] sm:$0xf]  ;;  %v436_v9 = vrot.slane %v434_v4, 7  ;;  %v437_v10 = vshll.u32 %v414_v1, 16 }
  0x26   : > { %403 = vst.msk [vmem:[#allocation2 + $0x4c] sm:$0xf] %vm382_vm0, %v2780_v0  ;;  %v444_v11 = vrot.slane %v442_v5, 7  ;;  %v445_v12 = vshll.u32 %v415_v2, 16  ;;  %v459_v13 = vshrl.u32 %v417_v7, 16  ;;  %v453_v14 = vrot.slane %v451_v6, 7 }
  0x27   : > { %405 = vst.msk [vmem:[#allocation2 + $0x54] sm:$0xf] %vm382_vm0, %v2780_v0  ;;  %v468_v15 = vshrl.u32 %v418_v8, 16  ;;  %v419_v16 = vld [vmem:[%s2922_s12 + $0x14] sm:$0xf]  ;;  %v439_v18 = vor.u32 %v437_v10, %v436_v9  ;;  %v440_v20 = vrot.slane %v436_v9, 4 }
  0x28   : > { %406 = vst.msk [vmem:[#allocation2 + $0x58] sm:$0xf] %vm382_vm0, %v2780_v0  ;;  %v476_v17 = vshrl.u32 %v419_v16, 16  ;;  %v454_v21 = vshll.u32 %v416_v3, 16  ;;  %v420_v22 = vld [vmem:[%s2922_s12 + $0x18] sm:$0xf]  ;;  %v447_v23 = vor.u32 %v445_v12, %v444_v11 }
  0x29   : > { %408 = vst.msk [vmem:[#allocation2 + $0x60] sm:$0xf] %vm382_vm0, %v2780_v0  ;;  %v461_v24 = vrot.slane %v459_v13, 7  ;;  %v462_v25 = vshll.u32 %v417_v7, 16  ;;  %v485_v26 = vshrl.u32 %v420_v22, 16  ;;  %v449_v28 = vrot.slane %v444_v11, 4 }
  0x2a   : > { %409 = vst.msk [vmem:[#allocation2 + $0x64] sm:$0xf] %vm382_vm0, %v2780_v0  ;;  %v457_v29 = vrot.slane %v453_v14, 4  ;;  %v470_v30 = vrot.slane %v468_v15, 7  ;;  %v471_v31 = vshll.u32 %v418_v8, 16  ;;  %v478_v34 = vrot.slane %v476_v17, 7 }
  0x2b   : > { %411 = vst.msk [vmem:[#allocation2 + $0x6c] sm:$0xf] %vm382_vm0, %v2780_v0  ;;  %v606_v33 = vld [vmem:[#allocation2 + $0x18] sm:$0xf]  ;;  %v479_v35 = vshll.u32 %v419_v16, 16  ;;  %v456_v38 = vor.u32 %v454_v21, %v453_v14  ;;  %v488_v39 = vshll.u32 %v420_v22, 16  ;;  %v598_v42 = vsel %vm2985_vm5, %v439_v18, %v597_v19 }
  0x2c   : > { %412 = vst.msk [vmem:[#allocation2 + $0x70] sm:$0xf] %vm382_vm0, %v2780_v0  ;;  %v421_v36 = vld [vmem:[%s2922_s12 + $0x1c] sm:$0xf]  ;;  %v422_v41 = vld [vmem:[%s2922_s12 + $0x20] sm:$0xf]  ;;  %v464_v44 = vor.u32 %v462_v25, %v461_v24  ;;  %v448_v47 = vsel %vm2993_vm6, %v440_v20, %v447_v23  ;;  %v473_v49 = vor.u32 %v471_v31, %v470_v30 }
  0x2d   : > { %389 = vst.msk [vmem:[#allocation2 + $0x14] sm:$0x1] %vm385_vm1, %v2780_v0  ;;  %v493_v40 = vshrl.u32 %v421_v36, 16  ;;  %v487_v45 = vrot.slane %v485_v26, 7  ;;  %v502_v46 = vshrl.u32 %v422_v41, 16  ;;  %v466_v48 = vrot.slane %v461_v24, 4 }
  0x2e   : > { %386 = vst.msk [vmem:[#allocation2 + $0x8] sm:$0x1] %vm385_vm1, %v2780_v0  ;;  %v613_v50 = vld [vmem:[#allocation2 + $0x24] sm:$0xf]  ;;  %v474_v51 = vrot.slane %v470_v30, 4  ;;  %v481_v54 = vor.u32 %v479_v35, %v478_v34  ;;  %v496_v56 = vshll.u32 %v421_v36, 16  ;;  %v607_v57 = vsel %vm2985_vm5, %v456_v38, %v606_v33 }
  0x2f   : > { %392 = vst.msk [vmem:[#allocation2 + $0x20] sm:$0x1] %vm385_vm1, %v2780_v0  ;;  %v495_v55 = vrot.slane %v493_v40, 7  ;;  %v620_v58 = vld [vmem:[#allocation2 + $0x30] sm:$0xf]  ;;  %v504_v59 = vrot.slane %v502_v46, 7  ;;  %v465_v61 = vsel %vm2993_vm6, %v457_v29, %v464_v44  ;;  %v490_v63 = vor.u32 %v488_v39, %v487_v45 }
  0x30   : > { %395 = vst.msk [vmem:[#allocation2 + $0x2c] sm:$0x1] %vm385_vm1, %v2780_v0  ;;  %v505_v60 = vshll.u32 %v422_v41, 16  ;;  %v483_v62 = vrot.slane %v478_v34, 4  ;;  %v614_v2 = vsel %vm2985_vm5, %v473_v49, %v613_v50  ;;  %v491_v4 = vrot.slane %v487_v45, 4  ;;  %s3077_s0 = scalar_lea.vmem [#allocation4], %s2892_s14 }
  0x31   : > { %398 = vst.msk [vmem:[#allocation2 + $0x38] sm:$0x1] %vm385_vm1, %v2780_v0  ;;  %v482_v6 = vsel %vm2993_vm6, %v474_v51, %v481_v54  ;;  %v498_v7 = vor.u32 %v496_v56, %v495_v55  ;;  %v500_v8 = vrot.slane %v495_v55, 4  ;;  %v627_v10 = vld [vmem:[#allocation2 + $0x3c] sm:$0xf]  ;;  %v621_v18 = vsel %vm2985_vm5, %v490_v63, %v620_v58  ;;  %p2448_p4 = scmp.le.s32.totalorder %s2762_s21, 0 }
  0x32   : > { %401 = vst.msk [vmem:[#allocation2 + $0x44] sm:$0x1] %vm385_vm1, %v2780_v0  ;;  %v424_v12 = vld [vmem:[%s2922_s12 + $0x28] sm:$0xf]  ;;  %v507_v13 = vor.u32 %v505_v60, %v504_v59  ;;  %v508_v19 = vrot.slane %v504_v59, 4 }
  0x33   : > { %404 = vst.msk [vmem:[#allocation2 + $0x50] sm:$0x1] %vm385_vm1, %v2780_v0  ;;  %v519_v15 = vshrl.u32 %v424_v12, 16  ;;  %v522_v16 = vshll.u32 %v424_v12, 16  ;;  %v425_v20 = vld [vmem:[%s2922_s12 + $0x2c] sm:$0xf]  ;;  %v499_v25 = vsel %vm2993_vm6, %v491_v4, %v498_v7 }
  0x34   : > { %407 = vst.msk [vmem:[#allocation2 + $0x5c] sm:$0x1] %vm385_vm1, %v2780_v0  ;;  %v603_v43 = vld [vmem:[#allocation2 + $0x14] sm:$0x1]  ;;  %v527_v24 = vshrl.u32 %v425_v20, 16  ;;  %v628_v30 = vsel %vm2985_vm5, %v507_v13, %v627_v10 }
  0x35   : > { %410 = vst.msk [vmem:[#allocation2 + $0x68] sm:$0x1] %vm385_vm1, %v2780_v0  ;;  %v604_v52 = vsel %vm3002_vm7, %v449_v28, %v603_v43  ;;  %v521_v23 = vrot.slane %v519_v15, 7  ;;  %v530_v28 = vshll.u32 %v425_v20, 16  ;;  %v634_v33 = vld [vmem:[#allocation2 + $0x48] sm:$0xf] }
  0x36   : > { %413 = vst.msk [vmem:[#allocation2 + $0x74] sm:$0x1] %vm385_vm1, %v2780_v0  ;;  %v610_v53 = vld [vmem:[#allocation2 + $0x20] sm:$0x1]  ;;  %v423_v0 = vld [vmem:[%s2922_s12 + $0x24] sm:$0xf] }
  0x37   : > { %599 = vst [vmem:[#allocation2 + $0xc] sm:$0xf] %v598_v42  ;;  %v611_v1 = vsel %vm3002_vm7, %v466_v48, %v610_v53  ;;  %v617_v3 = vld [vmem:[#allocation2 + $0x2c] sm:$0x1]  ;;  %v510_v5 = vshrl.u32 %v423_v0, 16  ;;  %v513_v11 = vshll.u32 %v423_v0, 16  ;;  %v524_v31 = vor.u32 %v522_v16, %v521_v23 }
  0x38   : > { %600 = vst.msk [vmem:[#allocation2 + $0x10] sm:$0xf] %vm382_vm0, %v448_v47  ;;  %v624_v9 = vld [vmem:[#allocation2 + $0x38] sm:$0x1]  ;;  %v618_v17 = vsel %vm3002_vm7, %v483_v62, %v617_v3  ;;  %v426_v34 = vld [vmem:[%s2922_s12 + $0x30] sm:$0xf] }
  0x39   : > { %605 = vst [vmem:[#allocation2 + $0x14] sm:$0x1] %v604_v52  ;;  %v512_v14 = vrot.slane %v510_v5, 7  ;;  %v631_v26 = vld [vmem:[#allocation2 + $0x44] sm:$0x1]  ;;  %v625_v29 = vsel %vm3002_vm7, %v500_v8, %v624_v9  ;;  %v525_v35 = vrot.slane %v521_v23, 4  ;;  %v635_v48 = vsel %vm2985_vm5, %v524_v31, %v634_v33 }
  0x3a   : > { %608 = vst [vmem:[#allocation2 + $0x18] sm:$0xf] %v607_v57  ;;  %v529_v36 = vrot.slane %v527_v24, 7  ;;  %v536_v38 = vshrl.u32 %v426_v34, 16  ;;  %v539_v39 = vshll.u32 %v426_v34, 16 }
  0x3b   : > { %609 = vst.msk [vmem:[#allocation2 + $0x1c] sm:$0xf] %vm382_vm0, %v465_v61  ;;  %v515_v21 = vor.u32 %v513_v11, %v512_v14  ;;  %v517_v22 = vrot.slane %v512_v14, 4  ;;  %v638_v42 = vld [vmem:[#allocation2 + $0x50] sm:$0x1] }
  0x3c   : > { %612 = vst [vmem:[#allocation2 + $0x20] sm:$0x1] %v611_v1  ;;  %v427_v43 = vld [vmem:[%s2922_s12 + $0x34] sm:$0xf]  ;;  %v532_v44 = vor.u32 %v530_v28, %v529_v36  ;;  %v534_v45 = vrot.slane %v529_v36, 4  ;;  %v538_v46 = vrot.slane %v536_v38, 7 }
  0x3d   : > { %615 = vst [vmem:[#allocation2 + $0x24] sm:$0xf] %v614_v2  ;;  %v516_v40 = vsel %vm2993_vm6, %v508_v19, %v515_v21  ;;  %v632_v41 = vsel %vm3002_vm7, %v517_v22, %v631_v26  ;;  %v544_v47 = vshrl.u32 %v427_v43, 16  ;;  %v641_v49 = vld [vmem:[#allocation2 + $0x54] sm:$0xf]  ;;  %v547_v50 = vshll.u32 %v427_v43, 16 }
  0x3e   : > { %616 = vst.msk [vmem:[#allocation2 + $0x28] sm:$0xf] %vm382_vm0, %v482_v6  ;;  %v533_v51 = vsel %vm2993_vm6, %v525_v35, %v532_v44  ;;  %v639_v52 = vsel %vm3002_vm7, %v534_v45, %v638_v42  ;;  %v541_v53 = vor.u32 %v539_v39, %v538_v46  ;;  %v428_v54 = vld [vmem:[%s2922_s12 + $0x38] sm:$0xf]  ;;  %v542_v55 = vrot.slane %v538_v46, 4 }
  0x3f   : > { %619 = vst [vmem:[#allocation2 + $0x2c] sm:$0x1] %v618_v17  ;;  %v546_v56 = vrot.slane %v544_v47, 7  ;;  %v553_v57 = vshrl.u32 %v428_v54, 16  ;;  %v556_v58 = vshll.u32 %v428_v54, 16 }
  0x40   : > { %622 = vst [vmem:[#allocation2 + $0x30] sm:$0xf] %v621_v18  ;;  %v642_v59 = vsel %vm2985_vm5, %v541_v53, %v641_v49  ;;  %v645_v60 = vld [vmem:[#allocation2 + $0x5c] sm:$0x1]  ;;  %v648_v2 = vld [vmem:[#allocation2 + $0x60] sm:$0xf] }
  0x41   : > { %623 = vst.msk [vmem:[#allocation2 + $0x34] sm:$0xf] %vm382_vm0, %v499_v25  ;;  %v429_v61 = vld [vmem:[%s2922_s12 + $0x3c] sm:$0xf]  ;;  %v549_v62 = vor.u32 %v547_v50, %v546_v56  ;;  %v551_v63 = vrot.slane %v546_v56, 4  ;;  %v555_v0 = vrot.slane %v553_v57, 7 }
  0x42   : > { %626 = vst [vmem:[#allocation2 + $0x38] sm:$0x1] %v625_v29  ;;  %v561_v1 = vshrl.u32 %v429_v61, 16  ;;  %v564_v3 = vshll.u32 %v429_v61, 16  ;;  %v652_v10 = vld [vmem:[#allocation2 + $0x68] sm:$0x1] }
  0x43   : > { %629 = vst [vmem:[#allocation2 + $0x3c] sm:$0xf] %v628_v30  ;;  %v550_v4 = vsel %vm2993_vm6, %v542_v55, %v549_v62  ;;  %v646_v5 = vsel %vm3002_vm7, %v551_v63, %v645_v60  ;;  %v558_v6 = vor.u32 %v556_v58, %v555_v0  ;;  %v559_v7 = vrot.slane %v555_v0, 4 }
  0x44   : > { %630 = vst.msk [vmem:[#allocation2 + $0x40] sm:$0xf] %vm382_vm0, %v516_v40  ;;  %v563_v8 = vrot.slane %v561_v1, 7 }
  0x45   : > { %633 = vst [vmem:[#allocation2 + $0x44] sm:$0x1] %v632_v41  ;;  %v649_v9 = vsel %vm2985_vm5, %v558_v6, %v648_v2 }
  0x46   : > { %636 = vst [vmem:[#allocation2 + $0x48] sm:$0xf] %v635_v48  ;;  %v566_v11 = vor.u32 %v564_v3, %v563_v8  ;;  %v568_v12 = vrot.slane %v563_v8, 4 }
  0x47   : > { %637 = vst.msk [vmem:[#allocation2 + $0x4c] sm:$0xf] %vm382_vm0, %v533_v51 }
  0x48   : > { %640 = vst [vmem:[#allocation2 + $0x50] sm:$0x1] %v639_v52  ;;  %v567_v13 = vsel %vm2993_vm6, %v559_v7, %v566_v11  ;;  %v653_v14 = vsel %vm3002_vm7, %v568_v12, %v652_v10 }
  0x49   : > { %643 = vst [vmem:[#allocation2 + $0x54] sm:$0xf] %v642_v59 }
  0x4a   : > { %644 = vst.msk [vmem:[#allocation2 + $0x58] sm:$0xf] %vm382_vm0, %v550_v4  ;;  %658 = sbr.rel (%p2448_p4) target bundleno = 90 (0x5a), region = 44 }
  0x4b   : > { %647 = vst [vmem:[#allocation2 + $0x5c] sm:$0x1] %v646_v5 }
  0x4c   : > { %650 = vst [vmem:[#allocation2 + $0x60] sm:$0xf] %v649_v9 }
  0x4d   : > { %651 = vst.msk [vmem:[#allocation2 + $0x64] sm:$0xf] %vm382_vm0, %v567_v13 }
  0x4e   : > { %654 = vst [vmem:[#allocation2 + $0x68] sm:$0x1] %v653_v14 }
  0x4f   : > { %v659_v15 = vld [vmem:[%s2956_s16] sm:$0xf]  ;;  %v660_v16 = vld [vmem:[%s2956_s16 + $0x4] sm:$0xf]  ;;  %v685_v24 = vld [vmem:[#allocation2 + $0x8] sm:$0x1] }
  0x50   : > { %v662_v17 = vshrl.u32 %v659_v15, 16  ;;  %v665_v18 = vshll.u32 %v659_v15, 16  ;;  %v670_v19 = vshrl.u32 %v660_v16, 16  ;;  %v673_v20 = vshll.u32 %v660_v16, 16  ;;  %v681_v23 = vld [vmem:[#allocation2] sm:$0xf] }
  0x52   : > { %v664_v21 = vrot.slane %v662_v17, 7  ;;  %v672_v22 = vrot.slane %v670_v19, 7 }
  0x54   : > { %v667_v25 = vor.u32 %v665_v18, %v664_v21  ;;  %v668_v26 = vrot.slane %v664_v21, 4  ;;  %v675_v28 = vor.u32 %v673_v20, %v672_v22  ;;  %v677_v29 = vrot.slane %v672_v22, 4 }
  0x56   : > { %v682_v30 = vsel %vm2985_vm5, %v667_v25, %v681_v23  ;;  %v676_v31 = vsel %vm2993_vm6, %v668_v26, %v675_v28  ;;  %v686_v33 = vsel %vm3002_vm7, %v677_v29, %v685_v24 }
  0x57   : > { %683 = vst [vmem:[#allocation2] sm:$0xf] %v682_v30 }
  0x58   : > { %684 = vst.msk [vmem:[#allocation2 + $0x4] sm:$0xf] %vm382_vm0, %v676_v31 }
  0x59   : > { %687 = vst [vmem:[#allocation2 + $0x8] sm:$0x1] %v686_v33 }
  0x5a PF: > { %p2449_p5 = scmp.ge.s32.totalorder %s2762_s21, 1 }
  0x5c   : > { %691 = sbr.rel (%p2449_p5) target bundleno = 108 (0x6c), region = 48 }
  0x61   : > { %v692_v34 = vld [vmem:[%s2963_s17] sm:$0xf]  ;;  %v693_v35 = vld [vmem:[%s2963_s17 + $0x4] sm:$0xf]  ;;  %v715_v43 = vld [vmem:[#allocation2 + $0x6c] sm:$0xf] }
  0x62   : > { %v695_v36 = vshrl.u32 %v692_v34, 16  ;;  %v698_v38 = vshll.u32 %v692_v34, 16  ;;  %v703_v39 = vshrl.u32 %v693_v35, 16  ;;  %v706_v40 = vshll.u32 %v693_v35, 16  ;;  %v719_v44 = vld [vmem:[#allocation2 + $0x74] sm:$0x1] }
  0x64   : > { %v697_v41 = vrot.slane %v695_v36, 7  ;;  %v705_v42 = vrot.slane %v703_v39, 7 }
  0x66   : > { %v700_v45 = vor.u32 %v698_v38, %v697_v41  ;;  %v701_v46 = vrot.slane %v697_v41, 4  ;;  %v708_v47 = vor.u32 %v706_v40, %v705_v42  ;;  %v710_v48 = vrot.slane %v705_v42, 4 }
  0x68   : > { %v716_v49 = vsel %vm2985_vm5, %v700_v45, %v715_v43  ;;  %v709_v50 = vsel %vm2993_vm6, %v701_v46, %v708_v47  ;;  %v720_v51 = vsel %vm3002_vm7, %v710_v48, %v719_v44 }
  0x69   : > { %717 = vst [vmem:[#allocation2 + $0x6c] sm:$0xf] %v716_v49 }
  0x6a   : > { %718 = vst.msk [vmem:[#allocation2 + $0x70] sm:$0xf] %vm382_vm0, %v709_v50 }
  0x6b   : > { %721 = vst [vmem:[#allocation2 + $0x74] sm:$0x1] %v720_v51 }
  0x6c PF: > { %v798_v52 = vld [vmem:[%s3630_s3] sm:$0xf]  ;;  %vm864_vm8 = vcmask 1043456   ;;  %v3102_v53 = vld [vmem:[#allocation2 + $0x18] sm:$0xff]  ;;  %vm839_vm9 = vcmask 64512   ;;  %v3105_v32 = vld [vmem:[#allocation2 + $0x30] sm:$0xff] }
  0x6d   : > { %v866_v27 = vsel %vm864_vm8, %v798_v52, 0  ;;  %v3107_v54 = vld [vmem:[#allocation2 + $0x48] sm:$0xff]  ;;  %v2595_v56 = vld [vmem:[#allocation2] sm:$0xff]  ;;  %v2529_v60 = vld [vmem:[%s3630_s3 + $0x10] sm:$0xf]  ;;  %vm1310_vm10 = vcmask 1042432  }
  0x6e   : > { %v2507_v37 = vld [vmem:[%s3630_s3 + $0x8] sm:$0xf]  ;;  %2606 = vmatpush.bf16.msra.mxu1 %v866_v27  ;;  %2607 = vmatpush.bf16.msra.mxu2 %v866_v27  ;;  %v2516_v57 = vld [vmem:[%s3630_s3 + $0xc] sm:$0xf]  ;;  %v2490_v58 = vld [vmem:[%s3630_s3 + $0x4] sm:$0xf] }
  0x6f   : > { %v1436_v55 = vsel %vm864_vm8, %v2507_v37, 0  ;;  %2608 = vmatpush.bf16.msra.mxu3 %v866_v27  ;;  %875 = vmatpush.bf16.msra.mxu0 %v866_v27  ;;  %v1546_v59 = vsel %vm864_vm8, %v2516_v57, 0  ;;  %v1211_v61 = vsel %vm864_vm8, %v2490_v58, 0  ;;  %v1678_v62 = vsel %vm864_vm8, %v2529_v60, 0  ;;  %v742_v63 = vld [vmem:[#allocation2] sm:$0xf] }
  0x70   : > { %v3132_v0 = vld [vmem:[#allocation2 + $0x4] sm:$0xf]  ;;  %v2548_v1 = vld [vmem:[%s3630_s3 + $0x18] sm:$0xf]  ;;  %v744_v2 = vld [vmem:[#allocation2 + $0xc] sm:$0xf] }
  0x71   : > { %2484 = vmatmul.msk.bf16.vlgmr.msra.gmra.mxu1 %vm839_vm9, %v3102_v53  ;;  %2486 = vmatmul.msk.bf16.vlgmr.msra.gmra.mxu2 %vm839_vm9, %v3105_v32  ;;  %v953_v3 = vshrl.u32 %v742_v63, 16  ;;  %v3137_v4 = vld [vmem:[#allocation2 + $0x10] sm:$0xf]  ;;  %v956_v5 = vshll.u32 %v742_v63, 16  ;;  %v962_v6 = vshll.u32 %v3132_v0, 16  ;;  %v966_v7 = vshrl.u32 %v3132_v0, 16 }
  0x72   : > { %1445 = vmatpush.bf16.msrb.mxu2 %v1436_v55  ;;  %2488 = vmatmul.msk.bf16.vlgmr.msra.gmra.mxu3 %vm839_vm9, %v3107_v54  ;;  %v1905_v8 = vsel %vm864_vm8, %v2548_v1, 0  ;;  %v977_v9 = vshrl.u32 %v744_v2, 16  ;;  %v980_v10 = vshll.u32 %v744_v2, 16  ;;  %v986_v11 = vshll.u32 %v3137_v4, 16  ;;  %v2561_v13 = vld [vmem:[%s3630_s3 + $0x1c] sm:$0xf] }
  0x73   : > { %1555 = vmatpush.bf16.msrb.mxu3 %v1546_v59  ;;  %2482 = vmatmul.msk.bf16.vlgmr.msra.gmra.mxu0 %vm839_vm9, %v2595_v56  ;;  %v990_v12 = vshrl.u32 %v3137_v4, 16  ;;  %v2539_v14 = vld [vmem:[%s3630_s3 + $0x14] sm:$0xf]  ;;  %v2571_v15 = vld [vmem:[%s3630_s3 + $0x20] sm:$0xf]  ;;  %v955_v17 = vrot.slane %v953_v3, 4 }
  0x74   : > { %1220 = vmatpush.bf16.msrb.mxu1 %v1211_v61  ;;  %1687 = vmatpush.bf16.msrb.mxu0 %v1678_v62  ;;  %v762_v16 = vld [vmem:[#allocation2 + $0x8] sm:$0x1]  ;;  %v958_v18 = vrot.slane %v956_v5, 5  ;;  %v964_v19 = vrot.slane %v962_v6, 5  ;;  %v968_v20 = vrot.slane %v966_v7, 4  ;;  %v979_v21 = vrot.slane %v977_v9, 4 }
  0x75   : > { %v982_v22 = vrot.slane %v980_v10, 5  ;;  %v988_v23 = vrot.slane %v986_v11, 5  ;;  %v992_v24 = vrot.slane %v990_v12, 4  ;;  %v3153_v25 = vld [vmem:[#allocation2 + $0x14] sm:$0x1]  ;;  %v2037_v26 = vsel %vm864_vm8, %v2561_v13, 0 }
  0x76   : > { %1914 = vmatpush.bf16.msra.mxu2 %v1905_v8  ;;  %v1795_v28 = vsel %vm864_vm8, %v2539_v14, 0  ;;  %v2154_v29 = vsel %vm864_vm8, %v2571_v15, 0  ;;  %v3158_v30 = vld [vmem:[#allocation2 + $0x24] sm:$0xff]  ;;  %v3160_v31 = vld [vmem:[#allocation2 + $0x3c] sm:$0xff]  ;;  %v1315_v33 = vrot.slane %v3132_v0, 5  ;;  %v3163_v34 = vld [vmem:[#allocation2 + $0x54] sm:$0xff]  ;;  %v959_v36 = vor.u32 %v958_v18, %v955_v17 }
  0x77   : > { %2046 = vmatpush.bf16.msra.mxu3 %v2037_v26  ;;  %v3165_v35 = vld [vmem:[#allocation2 + $0xc] sm:$0xff]  ;;  %v969_v38 = vor.u32 %v968_v20, %v964_v19  ;;  %v972_v39 = vshll.u32 %v762_v16, 16  ;;  %v772_v40 = vld [vmem:[#allocation2] sm:$0xe]  ;;  %vm1311_vm11 = vcmask 1046532   ;;  %v983_v41 = vor.u32 %v982_v22, %v979_v21  ;;  %s2605_s16 = sshll.u32 %s2762_s21, 4 }
  0x78   : > { %1804 = vmatpush.bf16.msra.mxu1 %v1795_v28  ;;  %2163 = vmatpush.bf16.msra.mxu0 %v2154_v29  ;;  %v993_v42 = vor.u32 %v992_v24, %v988_v23  ;;  %v996_v43 = vshll.u32 %v3153_v25, 16  ;;  %vm949_vm12 = vsmask.f32 3328  ;;  %vm950_vm13 = vsmask.f32 7440  ;;  %vm3178_vm14 = vmor %vm1310_vm10, %vm1311_vm11  ;;  %s2583_s9 = sshll.u32 %s2766_s22, 5 }
  0x79   : > { %v2499_v44 = vrot.slane %v772_v40, 9  ;;  %v1317_v45 = vrot.slane %v1315_v33, 4  ;;  %v1318_v46 = vrot.slane %v762_v16, 5  ;;  %v960_v47 = vrot.slane %v959_v36, 4  ;;  %vm3182_vm15 = vmor %vm949_vm12, %vm950_vm13  ;;  %v746_v55 = vld [vmem:[#allocation2 + $0x18] sm:$0xf]  ;;  %s2282_s13 = sadd.s32 %s2605_s16, %s2583_s9 }
  0x7a   : > { %v970_v48 = vrot.slane %v969_v38, 4  ;;  %v974_v49 = vrot.slane %v972_v39, 5  ;;  %v984_v52 = vrot.slane %v983_v41, 4  ;;  %v994_v27 = vrot.slane %v993_v42, 4  ;;  %v3186_v56 = vld [vmem:[#allocation2 + $0x1c] sm:$0xf] }
  0x7b   : > { %v998_v37 = vrot.slane %v996_v43, 5  ;;  %v1316_v57 = vsel %vm3178_vm14, %v2499_v44, %v1315_v33  ;;  %v1319_v58 = vsel %vm3178_vm14, %v1317_v45, %v1318_v46  ;;  %v965_v59 = vsel %vm3182_vm15, %v960_v47, %v964_v19  ;;  %v764_v15 = vld [vmem:[#allocation2 + $0x20] sm:$0x1]  ;;  %v773_v18 = vld [vmem:[#allocation2 + $0xc] sm:$0xe]  ;;  %s2584_s17 = sshll.u32 %s2282_s13, 3 }
  0x7c   : > { %v975_v60 = vsel %vm3182_vm15, %v970_v48, %v974_v49  ;;  %v1001_v61 = vshrl.u32 %v746_v55, 16  ;;  %v1004_v62 = vshll.u32 %v746_v55, 16  ;;  %v989_v63 = vsel %vm3182_vm15, %v984_v52, %v988_v23  ;;  %v3209_v28 = vld [vmem:[#allocation2 + $0x28] sm:$0xf]  ;;  %s2284_s21 = scalar_lea.hbm %s3632_s5, %s2584_s17  ;;  %s2285_s22 = sshll.u32 %s3077_s0, 4  ;;  %s2286_s22 = int_to_ptr.vmem [resolvable:$true] %s2285_s22 }
  0x7d   : > { %v999_v0 = vsel %vm3182_vm15, %v994_v27, %v998_v37  ;;  %v1010_v1 = vshll.u32 %v3186_v56, 16  ;;  %v1014_v2 = vshrl.u32 %v3186_v56, 16  ;;  %v1162_v3 = vunpack.c.l.b16 %v965_v59  ;;  %v765_v37 = vld [vmem:[#allocation2 + $0x2c] sm:$0x1]  ;;  %s2287_s27 = sshll.u32 %s2284_s21, 4  ;;  %s3649_s30 = sand.u32 1, %s2754_s19   ;;  %s2288_s27 = int_to_ptr.hbm [resolvable:$true] %s2287_s27 }
  0x7e   : > { %v1163_v5 = vunpack.c.l.b16 %v975_v60  ;;  %v1387_v6 = vunpack.c.l.b16 %v1316_v57  ;;  %v1388_v7 = vunpack.c.l.b16 %v1319_v58  ;;  %v1164_v8 = vunpack.c.l.b16 %v989_v63  ;;  %v774_v58 = vld [vmem:[#allocation2 + $0x18] sm:$0xe]  ;;  %s2270_s8 = scalar_lea.sflag [#allocation5], %s3649_s30  ;;  %s2698_s10 = sshra.s32 %s2288_s27, 4  ;;  %s2699_s10 = int_to_ptr.hbm [resolvable:$true] %s2698_s10 }
  0x7f   : > { %v1165_v9 = vunpack.c.l.b16 %v999_v0  ;;  %v1003_v10 = vrot.slane %v1001_v61, 4  ;;  %v1006_v11 = vrot.slane %v1004_v62, 5  ;;  %v1012_v12 = vrot.slane %v1010_v1, 5  ;;  %s2700_s26 = scalar_lea.hbm %s2699_s10, 128  ;;  %s2704_s9 = scalar_lea.hbm %s3632_s5, 512 }
  0x80   : > { %v1016_v13 = vrot.slane %v1014_v2, 4  ;;  %v1322_v14 = vrot.slane %v3137_v4, 5  ;;  %v1178_v16 = vpack.c.b16 %v1163_v5, %v1162_v3  ;;  %v1403_v17 = vpack.c.b16 %v1388_v7, %v1387_v6  ;;  %v748_v4 = vld [vmem:[#allocation2 + $0x24] sm:$0xf]  ;;  %v3233_v6 = vld [vmem:[#allocation2 + $0x34] sm:$0xf]  ;;  %p2701_p6 = scmp.ne.s32.totalorder %s2699_s10, %s2700_s26  ;;  %p2705_p10 = scmp.lt.s32.totalorder %s2699_s10, %s3632_s5 }
  0x81   : > { %2485 = vmatmul.msk.bf16.gmra.mxu1 %vm839_vm9, %v3158_v30  ;;  %2487 = vmatmul.msk.bf16.gmra.mxu2 %vm839_vm9, %v3160_v31  ;;  %v1179_v19 = vpack.c.b16 %v1165_v9, %v1164_v8  ;;  %v1007_v20 = vor.u32 %v1006_v11, %v1003_v10  ;;  %v1020_v22 = vshll.u32 %v764_v15, 16  ;;  %v2500_v23 = vrot.slane %v773_v18, 9  ;;  %p2706_p11 = scmp.lt.s32.totalorder %s2704_s9, %s2700_s26 }
  0x82   : > { %2489 = vmatmul.msk.bf16.gmra.mxu3 %vm839_vm9, %v3163_v34  ;;  %v1017_v21 = vor.u32 %v1016_v13, %v1012_v12  ;;  %v1324_v24 = vrot.slane %v1322_v14, 4  ;;  %v1325_v26 = vrot.slane %v3153_v25, 5  ;;  %v1025_v39 = vshrl.u32 %v748_v4, 16  ;;  %p2702_p7 = pnand %p2701_p6, %p2864_p3 }
  0x83   : > { %2483 = vmatmul.msk.bf16.gmra.mxu0 %vm839_vm9, %v3165_v35  ;;  %v1008_v29 = vrot.slane %v1007_v20, 4  ;;  %v1022_v36 = vrot.slane %v1020_v22, 5  ;;  %v1323_v38 = vsel %vm3178_vm14, %v2500_v23, %v1322_v14  ;;  %v1028_v40 = vshll.u32 %v748_v4, 16  ;;  %v766_v23 = vld [vmem:[#allocation2 + $0x38] sm:$0x1]  ;;  %p2707_p12 = por %p2706_p11, %p2705_p10 }
  0x84   : > { %v1018_v33 = vrot.slane %v1017_v21, 4  ;;  %v1326_v25 = vsel %vm3178_vm14, %v1324_v24, %v1325_v26  ;;  %v1034_v41 = vshll.u32 %v3209_v28, 16  ;;  %v1389_v44 = vunpack.c.l.b16 %v1323_v38  ;;  %p2703_p9 = pneg %p2702_p7 }
  0x85   : > { %v1013_v42 = vsel %vm3182_vm15, %v1008_v29, %v1012_v12  ;;  %v1390_v45 = vunpack.c.l.b16 %v1326_v25  ;;  %v1027_v46 = vrot.slane %v1025_v39, 4  ;;  %v1030_v47 = vrot.slane %v1028_v40, 5  ;;  %v775_v29 = vld [vmem:[#allocation2 + $0x24] sm:$0xe] }
  0x86   : > { %v1023_v43 = vsel %vm3182_vm15, %v1018_v33, %v1022_v36  ;;  %v1036_v48 = vrot.slane %v1034_v41, 5  ;;  %v1166_v52 = vunpack.c.l.b16 %v1013_v42  ;;  %v1329_v55 = vrot.slane %v3186_v56, 5  ;;  %v750_v56 = vld [vmem:[#allocation2 + $0x30] sm:$0xf]  ;;  %v752_v42 = vld [vmem:[#allocation2 + $0x3c] sm:$0xf]  ;;  %p2708_p13 = pnand %p2707_p12, %p2703_p9 }
  0x87   : > { %v1167_v27 = vunpack.c.l.b16 %v1023_v43  ;;  %v3222_v57 = vpack.c.b16 %v1390_v45, %v1389_v44  ;;  %v1031_v59 = vor.u32 %v1030_v47, %v1027_v46  ;;  %v1044_v61 = vshll.u32 %v765_v37, 16  ;;  %v3258_v43 = vld [vmem:[#allocation2 + $0x40] sm:$0xf] }
  0x88   : > { %v2501_v63 = vrot.slane %v774_v58, 9  ;;  %v1331_v0 = vrot.slane %v1329_v55, 4  ;;  %v1332_v1 = vrot.slane %v764_v15, 5  ;;  %v1049_v11 = vshrl.u32 %v750_v56, 16 }
  0x89   : > { %v3224_v62 = vpack.c.b16 %v1167_v27, %v1166_v52  ;;  %v1032_v2 = vrot.slane %v1031_v59, 4  ;;  %v1046_v5 = vrot.slane %v1044_v61, 5  ;;  %v1052_v12 = vshll.u32 %v750_v56, 16 }
  0x8a   : > { %v1330_v7 = vsel %vm3178_vm14, %v2501_v63, %v1329_v55  ;;  %v1333_v8 = vsel %vm3178_vm14, %v1331_v0, %v1332_v1  ;;  %v1058_v13 = vshll.u32 %v3233_v6, 16  ;;  %v1062_v14 = vshrl.u32 %v3233_v6, 16 }
  0x8b   : > { %v1037_v9 = vsel %vm3182_vm15, %v1032_v2, %v1036_v48  ;;  %v1391_v15 = vunpack.c.l.b16 %v1330_v7  ;;  %v1054_v20 = vrot.slane %v1052_v12, 5  ;;  %v1336_v26 = vrot.slane %v3209_v28, 5  ;;  %v767_v2 = vld [vmem:[#allocation2 + $0x44] sm:$0x1] }
  0x8c   : > { %v1060_v21 = vrot.slane %v1058_v13, 5  ;;  %v1064_v22 = vrot.slane %v1062_v14, 4  ;;  %v1068_v38 = vshll.u32 %v766_v23, 16  ;;  %v2502_v25 = vrot.slane %v775_v29, 9  ;;  %v3283_v13 = vld [vmem:[#allocation2 + $0x4c] sm:$0xf] }
  0x8d   : > { %v1338_v39 = vrot.slane %v1336_v26, 4  ;;  %v1082_v52 = vshll.u32 %v3258_v43, 16  ;;  %v1086_v27 = vshrl.u32 %v3258_v43, 16  ;;  %v1343_v1 = vrot.slane %v3233_v6, 5  ;;  %v754_v6 = vld [vmem:[#allocation2 + $0x48] sm:$0xf] }
  0x8e   : > { %v1065_v36 = vor.u32 %v1064_v22, %v1060_v21  ;;  %v1337_v44 = vsel %vm3178_vm14, %v2502_v25, %v1336_v26  ;;  %v1346_v12 = vrot.slane %v766_v23, 5  ;;  %v1110_v22 = vshrl.u32 %v3283_v13, 16 }
  0x8f   : > { %v1084_v63 = vrot.slane %v1082_v52, 5  ;;  %v1088_v0 = vrot.slane %v1086_v27, 4  ;;  %v1353_v27 = vrot.slane %v767_v2, 5 }
  0x90   : > { %v1066_v41 = vrot.slane %v1065_v36, 4 }
  0x91   : > { %2491 = vmatmul.msk.bf16.vlgmr.msrb.gmra.mxu1 %vm839_vm9, %v1178_v16  ;;  %2508 = vmatmul.msk.bf16.vlgmr.msrb.gmra.mxu2 %vm839_vm9, %v1403_v17  ;;  %v1392_v16 = vunpack.c.l.b16 %v1333_v8  ;;  %v1168_v17 = vunpack.c.l.b16 %v1037_v9  ;;  %v1089_v8 = vor.u32 %v1088_v0, %v1084_v63  ;;  %v1092_v9 = vshll.u32 %v767_v2, 16 }
  0x92   : > { %2521 = vmatmul.msk.bf16.vlgmr.msrb.gmra.mxu3 %vm839_vm9, %v3165_v35  ;;  %v1038_v35 = vshrl.u32 %v3209_v28, 16  ;;  %v1339_v28 = vrot.slane %v765_v37, 5  ;;  %v1393_v37 = vunpack.c.l.b16 %v1337_v44  ;;  %v777_v44 = vld [vmem:[#allocation2 + $0x3c] sm:$0xe] }
  0x93   : > { %2530 = vmatmul.msk.bf16.vlgmr.msrb.gmra.mxu0 %vm839_vm9, %v1179_v19  ;;  %v3245_v24 = vpack.c.b16 %v1392_v16, %v1391_v15  ;;  %v1090_v15 = vrot.slane %v1089_v8, 4  ;;  %v1094_v16 = vrot.slane %v1092_v9, 5 }
  0x94   : > { %v1040_v49 = vrot.slane %v1038_v35, 4  ;;  %v1070_v35 = vrot.slane %v1068_v38, 5  ;;  %v1340_v45 = vsel %vm3178_vm14, %v1338_v39, %v1339_v28  ;;  %v1112_v39 = vrot.slane %v1110_v22, 4 }
  0x95   : > { %v1394_v55 = vunpack.c.l.b16 %v1340_v45  ;;  %v1095_v26 = vsel %vm3182_vm15, %v1090_v15, %v1094_v16  ;;  %v3320_v16 = vld [vmem:[#allocation2 + $0x5c] sm:$0x1] }
  0x96   : > { %v1041_v60 = vor.u32 %v1040_v49, %v1036_v48  ;;  %v1071_v47 = vsel %vm3182_vm15, %v1066_v41, %v1070_v35  ;;  %v1073_v48 = vshrl.u32 %v752_v42, 16  ;;  %v1076_v49 = vshll.u32 %v752_v42, 16  ;;  %v768_v41 = vld [vmem:[#allocation2 + $0x50] sm:$0x1] }
  0x97   : > { %v1171_v59 = vunpack.c.l.b16 %v1071_v47  ;;  %v1350_v35 = vrot.slane %v3258_v43, 5  ;;  %v1116_v47 = vshll.u32 %v768_v41, 16 }
  0x98   : > { %v1042_v3 = vrot.slane %v1041_v60, 4  ;;  %v1075_v60 = vrot.slane %v1073_v48, 4  ;;  %v1078_v61 = vrot.slane %v1076_v49, 5  ;;  %v2504_v49 = vrot.slane %v777_v44, 9 }
  0x99   : > { %v1352_v52 = vrot.slane %v1350_v35, 4  ;;  %v1118_v43 = vrot.slane %v1116_v47, 5 }
  0x9a   : > { %v1047_v10 = vsel %vm3182_vm15, %v1042_v3, %v1046_v5  ;;  %v3271_v3 = vpack.c.b16 %v1394_v55, %v1393_v37  ;;  %v776_v5 = vld [vmem:[#allocation2 + $0x30] sm:$0xe]  ;;  %v1079_v7 = vor.u32 %v1078_v61, %v1075_v60  ;;  %v1351_v60 = vsel %vm3178_vm14, %v2504_v49, %v1350_v35 }
  0x9b   : > { %v1169_v18 = vunpack.c.l.b16 %v1047_v10  ;;  %v2503_v10 = vrot.slane %v776_v5, 9  ;;  %v1354_v61 = vsel %vm3178_vm14, %v1352_v52, %v1353_v27  ;;  %v1397_v8 = vunpack.c.l.b16 %v1351_v60 }
  0x9c   : > { %v1080_v14 = vrot.slane %v1079_v7, 4  ;;  %v1398_v9 = vunpack.c.l.b16 %v1354_v61  ;;  %v3348_v61 = vld [vmem:[#allocation2 + $0x68] sm:$0x1] }
  0x9d   : > { %v3248_v4 = vpack.c.b16 %v1169_v18, %v1168_v17  ;;  %v1344_v17 = vsel %vm3178_vm14, %v2503_v10, %v1343_v1 }
  0x9e   : > { %v1085_v23 = vsel %vm3182_vm15, %v1080_v14, %v1084_v63  ;;  %v1395_v29 = vunpack.c.l.b16 %v1344_v17  ;;  %v3322_v17 = vpack.c.b16 %v1398_v9, %v1397_v8 }
  0x9f   : > { %v1172_v28 = vunpack.c.l.b16 %v1085_v23  ;;  %v1140_v23 = vshll.u32 %v3320_v16, 16 }
  0xa1   : > { %2492 = vmatmul.msk.bf16.gmra.mxu1 %vm839_vm9, %v1179_v19  ;;  %2509 = vmatmul.msk.bf16.gmra.mxu2 %vm839_vm9, %v3222_v57  ;;  %v1051_v19 = vrot.slane %v1049_v11, 4  ;;  %v1345_v11 = vrot.slane %v1343_v1, 4 }
  0xa2   : > { %2522 = vmatmul.msk.bf16.gmra.mxu3 %vm839_vm9, %v3102_v53 }
  0xa3   : > { %2531 = vmatmul.msk.bf16.gmra.mxu0 %vm839_vm9, %v3224_v62  ;;  %v1055_v33 = vor.u32 %v1054_v20, %v1051_v19  ;;  %v1347_v18 = vsel %vm3178_vm14, %v1345_v11, %v1346_v12  ;;  %v1097_v19 = vshrl.u32 %v754_v6, 16  ;;  %v1100_v20 = vshll.u32 %v754_v6, 16 }
  0xa5   : > { %v1056_v40 = vrot.slane %v1055_v33, 4  ;;  %v1396_v33 = vunpack.c.l.b16 %v1347_v18  ;;  %v1099_v36 = vrot.slane %v1097_v19, 4  ;;  %v1102_v38 = vrot.slane %v1100_v20, 5  ;;  %v778_v20 = vld [vmem:[#allocation2 + $0x48] sm:$0xe] }
  0xa6   : > { %v1357_v18 = vrot.slane %v3283_v13, 5 }
  0xa7   : > { %v1061_v46 = vsel %vm3182_vm15, %v1056_v40, %v1060_v21  ;;  %v1106_v21 = vshll.u32 %v3283_v13, 16  ;;  %v1173_v40 = vunpack.c.l.b16 %v1095_v26  ;;  %v3296_v42 = vpack.c.b16 %v1396_v33, %v1395_v29 }
  0xa8   : > { %v1170_v58 = vunpack.c.l.b16 %v1061_v46  ;;  %v1103_v45 = vor.u32 %v1102_v38, %v1099_v36  ;;  %v2505_v26 = vrot.slane %v778_v20, 9  ;;  %v1359_v29 = vrot.slane %v1357_v18, 4 }
  0xa9   : > { %v1108_v25 = vrot.slane %v1106_v21, 5  ;;  %v3298_v48 = vpack.c.b16 %v1173_v40, %v1172_v28  ;;  %v1360_v13 = vrot.slane %v768_v41, 5  ;;  %v1142_v38 = vrot.slane %v1140_v23, 5 }
  0xaa   : > { %v3273_v56 = vpack.c.b16 %v1171_v59, %v1170_v58  ;;  %v1104_v37 = vrot.slane %v1103_v45, 4  ;;  %v756_v58 = vld [vmem:[#allocation2 + $0x54] sm:$0xf]  ;;  %v3308_v59 = vld [vmem:[#allocation2 + $0x58] sm:$0xf]  ;;  %v1358_v28 = vsel %vm3178_vm14, %v2505_v26, %v1357_v18 }
  0xab   : > { %v1113_v46 = vor.u32 %v1112_v39, %v1108_v25  ;;  %v1121_v1 = vshrl.u32 %v756_v58, 16  ;;  %v1124_v2 = vshll.u32 %v756_v58, 16  ;;  %v1130_v5 = vshll.u32 %v3308_v59, 16  ;;  %v3336_v39 = vld [vmem:[#allocation2 + $0x64] sm:$0xf] }
  0xac   : > { %v1109_v63 = vsel %vm3182_vm15, %v1104_v37, %v1108_v25  ;;  %v1134_v7 = vshrl.u32 %v3308_v59, 16  ;;  %v758_v25 = vld [vmem:[#allocation2 + $0x60] sm:$0xf]  ;;  %v1361_v40 = vsel %vm3178_vm14, %v1359_v29, %v1360_v13  ;;  %v1643_v47 = vshrl.u32 %v3336_v39, 16 }
  0xad   : > { %v1114_v55 = vrot.slane %v1113_v46, 4  ;;  %v1174_v10 = vunpack.c.l.b16 %v1109_v63  ;;  %v1123_v12 = vrot.slane %v1121_v1, 4  ;;  %v1126_v6 = vrot.slane %v1124_v2, 5 }
  0xae   : > { %v1132_v14 = vrot.slane %v1130_v5, 5  ;;  %v1136_v15 = vrot.slane %v1134_v7, 4  ;;  %v1630_v45 = vshrl.u32 %v758_v25, 16  ;;  %v1633_v41 = vshll.u32 %v758_v25, 16  ;;  %v779_v7 = vld [vmem:[#allocation2 + $0x54] sm:$0xe] }
  0xaf   : > { %v1119_v0 = vsel %vm3182_vm15, %v1114_v55, %v1118_v43  ;;  %v1127_v21 = vor.u32 %v1126_v6, %v1123_v12  ;;  %v1639_v46 = vshll.u32 %v3336_v39, 16  ;;  %v1399_v49 = vunpack.c.l.b16 %v1358_v28  ;;  %v3370_v6 = vld [vmem:[%s3631_s4] ss:$0 sm:$0xff] }
  0xb0   : > { %v1175_v11 = vunpack.c.l.b16 %v1119_v0  ;;  %v1137_v22 = vor.u32 %v1136_v15, %v1132_v14  ;;  %v1400_v52 = vunpack.c.l.b16 %v1361_v40  ;;  %v1632_v55 = vrot.slane %v1630_v45, 4 }
  0xb1   : > { %2493 = vmatmul.msk.bf16.gmra.mxu1 %vm839_vm9, %v3224_v62  ;;  %2510 = vmatmul.msk.bf16.gmra.mxu2 %vm839_vm9, %v3245_v24  ;;  %v1128_v33 = vrot.slane %v1127_v21, 4  ;;  %v1635_v43 = vrot.slane %v1633_v41, 5  ;;  %v1641_v58 = vrot.slane %v1639_v46, 5  ;;  %v1645_v60 = vrot.slane %v1643_v47, 4 }
  0xb2   : > { %2523 = vmatmul.msk.bf16.gmra.mxu3 %vm839_vm9, %v3158_v30  ;;  %v3325_v19 = vpack.c.b16 %v1175_v11, %v1174_v10  ;;  %v1138_v36 = vrot.slane %v1137_v22, 4  ;;  %v3350_v63 = vpack.c.b16 %v1400_v52, %v1399_v49  ;;  %v1364_v2 = vrot.slane %v3308_v59, 5  ;;  %v3398_v49 = vld [vmem:[#allocation2 + $0x60] sm:$0xff] }
  0xb3   : > { %2532 = vmatmul.msk.bf16.gmra.mxu0 %vm839_vm9, %v3248_v4  ;;  %v1133_v35 = vsel %vm3182_vm15, %v1128_v33, %v1132_v14  ;;  %v1636_v8 = vor.u32 %v1635_v43, %v1632_v55  ;;  %v1646_v9 = vor.u32 %v1645_v60, %v1641_v58  ;;  %v1649_v10 = vshll.u32 %v3348_v61, 16 }
  0xb4   : > { %v1143_v44 = vsel %vm3182_vm15, %v1138_v36, %v1142_v38  ;;  %v1176_v27 = vunpack.c.l.b16 %v1133_v35  ;;  %v2506_v11 = vrot.slane %v779_v7, 9  ;;  %v1366_v59 = vrot.slane %v1364_v2, 4 }
  0xb5   : > { %v1177_v37 = vunpack.c.l.b16 %v1143_v44  ;;  %v1367_v12 = vrot.slane %v3320_v16, 5  ;;  %v1637_v14 = vrot.slane %v1636_v8, 4  ;;  %v1647_v15 = vrot.slane %v1646_v9, 4 }
  0xb6   : > { %v1651_v18 = vrot.slane %v1649_v10, 5  ;;  %v1365_v16 = vsel %vm3178_vm14, %v2506_v11, %v1364_v2 }
  0xb7   : > { %v3354_v1 = vpack.c.b16 %v1177_v37, %v1176_v27  ;;  %v1368_v29 = vsel %vm3178_vm14, %v1366_v59, %v1367_v12  ;;  %v1642_v33 = vsel %vm3182_vm15, %v1637_v14, %v1641_v58  ;;  %v1401_v38 = vunpack.c.l.b16 %v1365_v16 }
  0xb8   : > { %v1652_v36 = vsel %vm3182_vm15, %v1647_v15, %v1651_v18  ;;  %v1402_v25 = vunpack.c.l.b16 %v1368_v29  ;;  %v1671_v28 = vunpack.c.l.b16 %v1642_v33 }
  0xb9   : > { %v1672_v40 = vunpack.c.l.b16 %v1652_v36 }
  0xba   : > { %v3391_v41 = vpack.c.b16 %v1402_v25, %v1401_v38 }
  0xbb   : > { %v3400_v52 = vpack.c.b16 %v1672_v40, %v1671_v28 }
  0xc1   : > { %2494 = vmatmul.msk.bf16.gmra.mxu1 %vm839_vm9, %v3248_v4  ;;  %2511 = vmatmul.msk.bf16.gmra.mxu2 %vm839_vm9, %v3271_v3 }
  0xc2   : > { %2524 = vmatmul.msk.bf16.gmra.mxu3 %vm839_vm9, %v3105_v32 }
  0xc3   : > { %2533 = vmatmul.msk.bf16.gmra.mxu0 %vm839_vm9, %v3273_v56 }
  0xd1   : > { %2495 = vmatmul.msk.bf16.gmra.mxu1 %vm839_vm9, %v3273_v56  ;;  %2512 = vmatmul.msk.bf16.gmra.mxu2 %vm839_vm9, %v3296_v42 }
  0xd2   : > { %2525 = vmatmul.msk.bf16.gmra.mxu3 %vm839_vm9, %v3160_v31 }
  0xd3   : > { %2534 = vmatmul.msk.bf16.gmra.mxu0 %vm839_vm9, %v3298_v48 }
  0xe1   : > { %2496 = vmatmul.msk.bf16.gmra.mxu1 %vm839_vm9, %v3298_v48  ;;  %2513 = vmatmul.msk.bf16.gmra.mxu2 %vm839_vm9, %v3322_v17 }
  0xe2   : > { %2526 = vmatmul.msk.bf16.gmra.mxu3 %vm839_vm9, %v3107_v54 }
  0xe3   : > { %2535 = vmatmul.msk.bf16.gmra.mxu0 %vm839_vm9, %v3325_v19 }
  0xee   : > { %v3352_v0 = vpop.f32.mrf.mxu1 }
  0xf0   : > { %v877_v5 = vpop.f32.mrf.mxu0 }
  0xf1   : > { %2497 = vmatmul.msk.bf16.gmra.mxu1 %vm839_vm9, %v3325_v19  ;;  %2514 = vmatmul.msk.bf16.gmra.mxu2 %vm839_vm9, %v3350_v63  ;;  %v917_v8 = vadd.f32 %v3370_v6, %v877_v5 }
  0xf2   : > { %2527 = vmatmul.msk.bf16.gmra.mxu3 %vm839_vm9, %v3163_v34 }
  0xf3   : > { %2536 = vmatmul.msk.bf16.gmra.mxu0 %vm839_vm9, %v3354_v1 }
  0xf4   : > { %v897_v20 = vpop.f32.mrf.mxu2 }
  0xf5   : > { %v3373_v21 = vadd.f32 %v3370_v6, %v897_v20  ;;  %v907_v22 = vpop.f32.mrf.mxu3 }
  0xf6   : > { %v3376_v23 = vadd.f32 %v3370_v6, %v907_v22  ;;  %v3378_v26 = vpop.f32.mrf.mxu1 }
  0xf8   : > { %v879_v13 = vpop.f32.mrf.mxu0 }
  0xf9   : > { %v918_v15 = vadd.f32 %v3370_v6, %v879_v13 }
  0xfc   : > { %v899_v35 = vpop.f32.mrf.mxu2 }
  0xfd   : > { %v3389_v44 = vadd.f32 %v3370_v6, %v899_v35  ;;  %v909_v45 = vpop.f32.mrf.mxu3 }
  0xfe   : > { %v3394_v46 = vadd.f32 %v3370_v6, %v909_v45  ;;  %v3396_v47 = vpop.f32.mrf.mxu1 }
 0x100   : > { %v882_v27 = vpop.f32.mrf.mxu0 }
 0x101   : > { %2498 = vmatmul.msk.bf16.gmra.mxu1 %vm839_vm9, %v3354_v1  ;;  %2515 = vmatmul.msk.bf16.gmra.mxu2 %vm839_vm9, %v3391_v41 }
 0x102   : > { %2528 = vmatmul.msk.bf16.gmra.mxu3 %vm839_vm9, %v3398_v49 }
 0x103   : > { %2537 = vmatmul.msk.bf16.gmra.mxu0 %vm839_vm9, %v3400_v52 }
 0x104   : > { %v902_v37 = vpop.f32.mrf.mxu2 }
 0x105   : > { %v3411_v55 = vadd.f32 %v3370_v6, %v902_v37  ;;  %v912_v43 = vpop.f32.mrf.mxu3 }
 0x106   : > { %v3414_v58 = vadd.f32 %v3370_v6, %v912_v43  ;;  %v3416_v60 = vpop.f32.mrf.mxu1 }
 0x108   : > { %v884_v2 = vpop.f32.mrf.mxu0 }
 0x10c   : > { %v904_v7 = vpop.f32.mrf.mxu2 }
 0x10d   : > { %v3420_v9 = vadd.f32 %v3370_v6, %v904_v7  ;;  %v914_v10 = vpop.f32.mrf.mxu3 }
 0x10e   : > { %v3423_v11 = vadd.f32 %v3370_v6, %v914_v10  ;;  %v1222_v59 = vpop.f32.mrf.mxu1 }
 0x10f   : > { %v1262_v12 = vadd.f32 %v1222_v59, %v917_v8 }
 0x110   : > { %v1689_v14 = vpop.f32.mrf.mxu0 }
 0x111   : > { %2540 = vmatmul.msk.bf16.vlgmr.msra.gmra.mxu1 %vm839_vm9, %v3222_v57  ;;  %2553 = vmatmul.msk.bf16.vlgmr.msra.gmra.mxu2 %vm839_vm9, %v3102_v53  ;;  %v919_v53 = vadd.f32 %v3370_v6, %v882_v27  ;;  %v920_v27 = vadd.f32 %v3370_v6, %v884_v2 }
 0x112   : > { %2562 = vmatmul.msk.bf16.vlgmr.msra.gmra.mxu3 %vm839_vm9, %v3224_v62 }
 0x113   : > { %2572 = vmatmul.msk.bf16.vlgmr.msra.gmra.mxu0 %vm839_vm9, %v3245_v24 }
 0x114   : > { %v1447_v5 = vpop.f32.mrf.mxu2 }
 0x115   : > { %v1487_v18 = vadd.f32 %v1447_v5, %v1262_v12  ;;  %v1557_v20 = vpop.f32.mrf.mxu3  ;;  %v921_v12 = vadd.f32 %v3370_v6, %v3352_v0 }
 0x116   : > { %v1224_v22 = vpop.f32.mrf.mxu1 }
 0x117   : > { %v1597_v16 = vadd.f32 %v1557_v20, %v1487_v18  ;;  %v1263_v29 = vadd.f32 %v1224_v22, %v918_v15  ;;  %v922_v22 = vadd.f32 %v3370_v6, %v3378_v26 }
 0x118   : > { %v1691_v33 = vpop.f32.mrf.mxu0 }
 0x119   : > { %v3434_v36 = vadd.f32 %v1689_v14, %v1597_v16 }
 0x11c   : > { %v1449_v57 = vpop.f32.mrf.mxu2 }
 0x11d   : > { %v1488_v38 = vadd.f32 %v1449_v57, %v1263_v29  ;;  %v1559_v25 = vpop.f32.mrf.mxu3 }
 0x11e   : > { %v1227_v62 = vpop.f32.mrf.mxu1 }
 0x11f   : > { %v1598_v28 = vadd.f32 %v1559_v25, %v1488_v38  ;;  %v1264_v40 = vadd.f32 %v1227_v62, %v919_v53  ;;  %v923_v25 = vadd.f32 %v3370_v6, %v3396_v47 }
 0x120   : > { %v1694_v35 = vpop.f32.mrf.mxu0 }
 0x121   : > { %2541 = vmatmul.msk.bf16.gmra.mxu1 %vm839_vm9, %v3245_v24  ;;  %2554 = vmatmul.msk.bf16.gmra.mxu2 %vm839_vm9, %v3158_v30  ;;  %v3441_v13 = vadd.f32 %v1691_v33, %v1598_v28 }
 0x122   : > { %2563 = vmatmul.msk.bf16.gmra.mxu3 %vm839_vm9, %v3248_v4 }
 0x123   : > { %2573 = vmatmul.msk.bf16.gmra.mxu0 %vm839_vm9, %v3271_v3 }
 0x124   : > { %v1452_v45 = vpop.f32.mrf.mxu2 }
 0x125   : > { %v1489_v37 = vadd.f32 %v1452_v45, %v1264_v40  ;;  %v1562_v43 = vpop.f32.mrf.mxu3 }
 0x126   : > { %v1229_v7 = vpop.f32.mrf.mxu1 }
 0x127   : > { %v1599_v8 = vadd.f32 %v1562_v43, %v1489_v37  ;;  %v1265_v10 = vadd.f32 %v1229_v7, %v920_v27  ;;  %v924_v27 = vadd.f32 %v3370_v6, %v3416_v60 }
 0x128   : > { %v1696_v24 = vpop.f32.mrf.mxu0 }
 0x129   : > { %v3448_v59 = vadd.f32 %v1694_v35, %v1599_v8 }
 0x12c   : > { %v1454_v30 = vpop.f32.mrf.mxu2 }
 0x12d   : > { %v1490_v14 = vadd.f32 %v1454_v30, %v1265_v10  ;;  %v1564_v4 = vpop.f32.mrf.mxu3 }
 0x12e   : > { %v1232_v5 = vpop.f32.mrf.mxu1 }
 0x12f   : > { %v1600_v15 = vadd.f32 %v1564_v4, %v1490_v14  ;;  %v1266_v18 = vadd.f32 %v1232_v5, %v921_v12 }
 0x130   : > { %v1699_v20 = vpop.f32.mrf.mxu0 }
 0x131   : > { %2542 = vmatmul.msk.bf16.gmra.mxu1 %vm839_vm9, %v3271_v3  ;;  %2555 = vmatmul.msk.bf16.gmra.mxu2 %vm839_vm9, %v3105_v32  ;;  %v3456_v2 = vadd.f32 %v1696_v24, %v1600_v15 }
 0x132   : > { %2564 = vmatmul.msk.bf16.gmra.mxu3 %vm839_vm9, %v3273_v56 }
 0x133   : > { %2574 = vmatmul.msk.bf16.gmra.mxu0 %vm839_vm9, %v3296_v42 }
 0x134   : > { %v1457_v0 = vpop.f32.mrf.mxu2 }
 0x135   : > { %v1491_v16 = vadd.f32 %v1457_v0, %v1266_v18  ;;  %v1567_v29 = vpop.f32.mrf.mxu3 }
 0x136   : > { %v1234_v33 = vpop.f32.mrf.mxu1 }
 0x137   : > { %v1601_v57 = vadd.f32 %v1567_v29, %v1491_v16  ;;  %v1267_v3 = vadd.f32 %v1234_v33, %v922_v22  ;;  %v1765_v33 = vrot.slane %v3336_v39, 5  ;;  %v760_v39 = vld [vmem:[#allocation2 + $0x6c] sm:$0xf] }
 0x138   : > { %v1701_v53 = vpop.f32.mrf.mxu0 }
 0x139   : > { %v3464_v38 = vadd.f32 %v1699_v20, %v1601_v57 }
 0x13c   : > { %v1459_v32 = vpop.f32.mrf.mxu2 }
 0x13d   : > { %v1492_v56 = vadd.f32 %v1459_v32, %v1267_v3  ;;  %v1569_v62 = vpop.f32.mrf.mxu3 }
 0x13e   : > { %v1237_v28 = vpop.f32.mrf.mxu1 }
 0x13f   : > { %v1602_v40 = vadd.f32 %v1569_v62, %v1492_v56  ;;  %v1268_v35 = vadd.f32 %v1237_v28, %v923_v25  ;;  %v1768_v25 = vrot.slane %v3348_v61, 5  ;;  %v1767_v56 = vrot.slane %v1765_v33, 4 }
 0x140   : > { %v1704_v45 = vpop.f32.mrf.mxu0 }
 0x141   : > { %2543 = vmatmul.msk.bf16.gmra.mxu1 %vm839_vm9, %v3296_v42  ;;  %2556 = vmatmul.msk.bf16.gmra.mxu2 %vm839_vm9, %v3160_v31  ;;  %v3472_v26 = vadd.f32 %v1701_v53, %v1602_v40 }
 0x142   : > { %2565 = vmatmul.msk.bf16.gmra.mxu3 %vm839_vm9, %v3298_v48 }
 0x143   : > { %2575 = vmatmul.msk.bf16.gmra.mxu0 %vm839_vm9, %v3322_v17 }
 0x144   : > { %v1462_v47 = vpop.f32.mrf.mxu2 }
 0x145   : > { %v1493_v37 = vadd.f32 %v1462_v47, %v1268_v35  ;;  %v1572_v43 = vpop.f32.mrf.mxu3  ;;  %v1992_v47 = vshll.u32 %v760_v39, 16 }
 0x146   : > { %v1239_v7 = vpop.f32.mrf.mxu1 }
 0x147   : > { %v1603_v8 = vadd.f32 %v1572_v43, %v1493_v37  ;;  %v1269_v42 = vadd.f32 %v1239_v7, %v924_v27 }
 0x148   : > { %v1706_v10 = vpop.f32.mrf.mxu0 }
 0x149   : > { %v3480_v24 = vadd.f32 %v1704_v45, %v1603_v8  ;;  %v1989_v45 = vshrl.u32 %v760_v39, 16 }
 0x14c   : > { %v1464_v31 = vpop.f32.mrf.mxu2 }
 0x14d   : > { %v1494_v30 = vadd.f32 %v1464_v31, %v1269_v42  ;;  %v1574_v12 = vpop.f32.mrf.mxu3  ;;  %v1991_v31 = vrot.slane %v1989_v45, 4 }
 0x14e   : > { %v1242_v14 = vpop.f32.mrf.mxu1 }
 0x14f   : > { %v1604_v48 = vadd.f32 %v1574_v12, %v1494_v30  ;;  %v1270_v4 = vadd.f32 %v1242_v14, %v3373_v21  ;;  %v1994_v30 = vrot.slane %v1992_v47, 5 }
 0x150   : > { %v1709_v5 = vpop.f32.mrf.mxu0 }
 0x151   : > { %2544 = vmatmul.msk.bf16.gmra.mxu1 %vm839_vm9, %v3322_v17  ;;  %2557 = vmatmul.msk.bf16.gmra.mxu2 %vm839_vm9, %v3107_v54  ;;  %v3487_v6 = vadd.f32 %v1706_v10, %v1604_v48  ;;  %v771_v48 = vld [vmem:[#allocation2 + $0x74] sm:$0x1] }
 0x152   : > { %2566 = vmatmul.msk.bf16.gmra.mxu3 %vm839_vm9, %v3325_v19  ;;  %v780_v19 = vld [vmem:[#allocation2 + $0x60] sm:$0xe] }
 0x153   : > { %2576 = vmatmul.msk.bf16.gmra.mxu0 %vm839_vm9, %v3350_v63 }
 0x154   : > { %v1467_v60 = vpop.f32.mrf.mxu2 }
 0x155   : > { %v1495_v15 = vadd.f32 %v1467_v60, %v1270_v4  ;;  %v1577_v18 = vpop.f32.mrf.mxu3 }
 0x156   : > { %v1244_v20 = vpop.f32.mrf.mxu1 }
 0x157   : > { %v1605_v21 = vadd.f32 %v1577_v18, %v1495_v15  ;;  %v1271_v0 = vadd.f32 %v1244_v20, %v3389_v44  ;;  %v2538_v44 = vrot.slane %v780_v19, 9  ;;  %v1995_v20 = vor.u32 %v1994_v30, %v1991_v31 }
 0x158   : > { %v1711_v22 = vpop.f32.mrf.mxu0 }
 0x159   : > { %v3494_v17 = vadd.f32 %v1709_v5, %v1605_v21 }
 0x15c   : > { %v1469_v16 = vpop.f32.mrf.mxu2 }
 0x15d   : > { %v1496_v54 = vadd.f32 %v1469_v16, %v1271_v0  ;;  %v1579_v29 = vpop.f32.mrf.mxu3  ;;  %v2008_v0 = vshll.u32 %v771_v48, 16 }
 0x15e   : > { %v1247_v57 = vpop.f32.mrf.mxu1 }
 0x15f   : > { %v1606_v3 = vadd.f32 %v1579_v29, %v1496_v54  ;;  %v1272_v53 = vadd.f32 %v1247_v57, %v3411_v55  ;;  %v761_v55 = vld [vmem:[#allocation2 + $0x70] sm:$0xf]  ;;  %v781_v29 = vld [vmem:[#allocation2 + $0x6c] sm:$0xe]  ;;  %v1996_v57 = vrot.slane %v1995_v20, 4 }
 0x160   : > { %v1714_v32 = vpop.f32.mrf.mxu0  ;;  %v1998_v27 = vshll.u32 %v761_v55, 16  ;;  %v2002_v37 = vshrl.u32 %v761_v55, 16  ;;  %v2124_v54 = vrot.slane %v761_v55, 5 }
 0x161   : > { %2545 = vmatmul.msk.bf16.gmra.mxu1 %vm839_vm9, %v3350_v63  ;;  %2558 = vmatmul.msk.bf16.gmra.mxu2 %vm839_vm9, %v3163_v34  ;;  %v3503_v62 = vadd.f32 %v1711_v22, %v1606_v3  ;;  %v1766_v63 = vsel %vm3178_vm14, %v2538_v44, %v1765_v33  ;;  %v1769_v34 = vsel %vm3178_vm14, %v1767_v56, %v1768_v25  ;;  %v2010_v3 = vrot.slane %v2008_v0, 5 }
 0x162   : > { %2567 = vmatmul.msk.bf16.gmra.mxu3 %vm839_vm9, %v3354_v1  ;;  %v1788_v8 = vunpack.c.l.b16 %v1766_v63  ;;  %v1789_v42 = vunpack.c.l.b16 %v1769_v34  ;;  %v2000_v12 = vrot.slane %v1998_v27, 5  ;;  %v2004_v14 = vrot.slane %v2002_v37, 4 }
 0x163   : > { %2577 = vmatmul.msk.bf16.gmra.mxu0 %vm839_vm9, %v3391_v41 }
 0x164   : > { %v1472_v28 = vpop.f32.mrf.mxu2  ;;  %v1790_v18 = vpack.c.b16 %v1789_v42, %v1788_v8  ;;  %v2005_v21 = vor.u32 %v2004_v14, %v2000_v12 }
 0x165   : > { %v1497_v61 = vadd.f32 %v1472_v28, %v1272_v53  ;;  %v1582_v40 = vpop.f32.mrf.mxu3  ;;  %v2126_v53 = vrot.slane %v2124_v54, 4 }
 0x166   : > { %v1249_v35 = vpop.f32.mrf.mxu1  ;;  %v2006_v19 = vrot.slane %v2005_v21, 4 }
 0x167   : > { %v1607_v1 = vadd.f32 %v1582_v40, %v1497_v61  ;;  %v1273_v43 = vadd.f32 %v1249_v35, %v3420_v9 }
 0x168   : > { %v1716_v7 = vpop.f32.mrf.mxu0  ;;  %v2011_v39 = vsel %vm3182_vm15, %v2006_v19, %v2010_v3 }
 0x169   : > { %v3514_v10 = vadd.f32 %v1714_v32, %v1607_v1  ;;  %v2127_v32 = vrot.slane %v771_v48, 5  ;;  %v2031_v35 = vunpack.c.l.b16 %v2011_v39  ;;  %v2604_v1 = vld [vmem:[#allocation2 + $0x6c] sm:$0xff] }
 0x16b   : > { %v2128_v40 = vsel %vm3178_vm14, %v2126_v53, %v2127_v32 }
 0x16c   : > { %v1474_v4 = vpop.f32.mrf.mxu2  ;;  %v2148_v47 = vunpack.c.l.b16 %v2128_v40 }
 0x16d   : > { %v1498_v5 = vadd.f32 %v1474_v4, %v1273_v43  ;;  %v1584_v60 = vpop.f32.mrf.mxu3 }
 0x16e   : > { %v1252_v15 = vpop.f32.mrf.mxu1 }
 0x16f   : > { %v1608_v22 = vadd.f32 %v1584_v60, %v1498_v5  ;;  %v1274_v9 = vadd.f32 %v1252_v15, %v3376_v23  ;;  %v2570_v23 = vrot.slane %v781_v29, 9 }
 0x170   : > { %v1719_v16 = vpop.f32.mrf.mxu0 }
 0x171   : > { %2546 = vmatmul.msk.bf16.gmra.mxu1 %vm839_vm9, %v3391_v41  ;;  %2559 = vmatmul.msk.bf16.gmra.mxu2 %vm839_vm9, %v3398_v49  ;;  %v3521_v33 = vadd.f32 %v1716_v7, %v1608_v22  ;;  %v2001_v49 = vsel %vm3182_vm15, %v1996_v57, %v2000_v12  ;;  %v2125_v61 = vsel %vm3178_vm14, %v2570_v23, %v2124_v54 }
 0x172   : > { %2568 = vmatmul.msk.bf16.gmra.mxu3 %vm839_vm9, %v3400_v52  ;;  %v2030_v34 = vunpack.c.l.b16 %v2001_v49  ;;  %v2147_v45 = vunpack.c.l.b16 %v2125_v61 }
 0x173   : > { %2578 = vmatmul.msk.bf16.gmra.mxu0 %vm839_vm9, %v1790_v18 }
 0x174   : > { %v1477_v25 = vpop.f32.mrf.mxu2  ;;  %v2032_v7 = vpack.c.b16 %v2031_v35, %v2030_v34 }
 0x175   : > { %v1499_v44 = vadd.f32 %v1477_v25, %v1274_v9  ;;  %v1587_v56 = vpop.f32.mrf.mxu3 }
 0x176   : > { %v1254_v41 = vpop.f32.mrf.mxu1 }
 0x177   : > { %v1609_v55 = vadd.f32 %v1587_v56, %v1499_v44  ;;  %v1275_v52 = vadd.f32 %v1254_v41, %v3394_v46  ;;  %v2149_v46 = vpack.c.b16 %v2148_v47, %v2147_v45 }
 0x178   : > { %v1721_v28 = vpop.f32.mrf.mxu0 }
 0x179   : > { %v3535_v63 = vadd.f32 %v1719_v16, %v1609_v55 }
 0x17c   : > { %v1479_v27 = vpop.f32.mrf.mxu2 }
 0x17d   : > { %v1500_v37 = vadd.f32 %v1479_v27, %v1275_v52  ;;  %v1589_v51 = vpop.f32.mrf.mxu3 }
 0x17e   : > { %v1257_v43 = vpop.f32.mrf.mxu1 }
 0x17f   : > { %v1610_v8 = vadd.f32 %v1589_v51, %v1500_v37  ;;  %v1276_v42 = vadd.f32 %v1257_v43, %v3414_v58 }
 0x180   : > { %v1724_v31 = vpop.f32.mrf.mxu0 }
 0x181   : > { %2547 = vmatmul.msk.bf16.gmra.mxu1 %vm839_vm9, %v1790_v18  ;;  %2560 = vmatmul.msk.bf16.gmra.mxu2 %vm839_vm9, %v2604_v1  ;;  %v3540_v50 = vadd.f32 %v1721_v28, %v1610_v8 }
 0x182   : > { %2569 = vmatmul.msk.bf16.gmra.mxu3 %vm839_vm9, %v2032_v7 }
 0x183   : > { %2579 = vmatmul.msk.bf16.gmra.mxu0 %vm839_vm9, %v2149_v46 }
 0x184   : > { %v1482_v30 = vpop.f32.mrf.mxu2 }
 0x185   : > { %v1501_v12 = vadd.f32 %v1482_v30, %v1276_v42  ;;  %v1592_v14 = vpop.f32.mrf.mxu3 }
 0x186   : > { %v1259_v48 = vpop.f32.mrf.mxu1 }
 0x187   : > { %v1611_v4 = vadd.f32 %v1592_v14, %v1501_v12  ;;  %v1277_v5 = vadd.f32 %v1259_v48, %v3423_v11 }
 0x188   : > { %v1726_v60 = vpop.f32.mrf.mxu0 }
 0x189   : > { %v3545_v58 = vadd.f32 %v1724_v31, %v1611_v4 }
 0x18c   : > { %v1484_v15 = vpop.f32.mrf.mxu2 }
 0x18d   : > { %v1502_v18 = vadd.f32 %v1484_v15, %v1277_v5  ;;  %v1594_v20 = vpop.f32.mrf.mxu3 }
 0x18e   : > { %v1806_v21 = vpop.f32.mrf.mxu1 }
 0x18f   : > { %v1612_v0 = vadd.f32 %v1594_v20, %v1502_v18  ;;  %v1846_v16 = vadd.f32 %v1806_v21, %v3434_v36 }
 0x190   : > { %v2165_v22 = vpop.f32.mrf.mxu0 }
 0x191   : > { %v3547_v9 = vadd.f32 %v1726_v60, %v1612_v0 }
 0x194   : > { %v1916_v54 = vpop.f32.mrf.mxu2 }
 0x195   : > { %v1956_v29 = vadd.f32 %v1916_v54, %v1846_v16  ;;  %v2048_v57 = vpop.f32.mrf.mxu3 }
 0x196   : > { %v1808_v19 = vpop.f32.mrf.mxu1 }
 0x197   : > { %v2088_v11 = vadd.f32 %v2048_v57, %v1956_v29  ;;  %v1847_v53 = vadd.f32 %v1808_v19, %v3441_v13 }
 0x198   : > { %v2167_v3 = vpop.f32.mrf.mxu0 }
 0x199   : > { %v2205_v23 = vadd.f32 %v2165_v22, %v2088_v11 }
 0x19b   : > { %2253 = vst [vmem:[%s3077_s0] sm:$0xff] %v2205_v23 }
 0x19c   : > { %v1918_v32 = vpop.f32.mrf.mxu2 }
 0x19d   : > { %v1957_v25 = vadd.f32 %v1918_v32, %v1847_v53  ;;  %v2050_v44 = vpop.f32.mrf.mxu3 }
 0x19e   : > { %v1811_v56 = vpop.f32.mrf.mxu1 }
 0x19f   : > { %v2089_v41 = vadd.f32 %v2050_v44, %v1957_v25  ;;  %v1848_v36 = vadd.f32 %v1811_v56, %v3448_v59 }
 0x1a0   : > { %v2170_v49 = vpop.f32.mrf.mxu0 }
 0x1a1   : > { %v2206_v39 = vadd.f32 %v2167_v3, %v2089_v41 }
 0x1a3   : > { %2254 = vst [vmem:[%s3077_s0 + $0x8] sm:$0xff] %v2206_v39 }
 0x1a4   : > { %v1921_v55 = vpop.f32.mrf.mxu2 }
 0x1a5   : > { %v1958_v52 = vadd.f32 %v1921_v55, %v1848_v36  ;;  %v2053_v28 = vpop.f32.mrf.mxu3 }
 0x1a6   : > { %v1813_v61 = vpop.f32.mrf.mxu1 }
 0x1a7   : > { %v2090_v40 = vadd.f32 %v2053_v28, %v1958_v52  ;;  %v1849_v13 = vadd.f32 %v1813_v61, %v3456_v2 }
 0x1a8   : > { %v2172_v34 = vpop.f32.mrf.mxu0 }
 0x1a9   : > { %v2207_v35 = vadd.f32 %v2170_v49, %v2090_v40 }
 0x1ab   : > { %2255 = vst [vmem:[%s3077_s0 + $0x10] sm:$0xff] %v2207_v35 }
 0x1ac   : > { %v1923_v45 = vpop.f32.mrf.mxu2 }
 0x1ad   : > { %v1959_v47 = vadd.f32 %v1923_v45, %v1849_v13  ;;  %v2055_v27 = vpop.f32.mrf.mxu3 }
 0x1ae   : > { %v1816_v37 = vpop.f32.mrf.mxu1 }
 0x1af   : > { %v2091_v51 = vadd.f32 %v2055_v27, %v1959_v47  ;;  %v1850_v59 = vadd.f32 %v1816_v37, %v3464_v38 }
 0x1b0   : > { %v2175_v1 = vpop.f32.mrf.mxu0 }
 0x1b1   : > { %v2208_v43 = vadd.f32 %v2172_v34, %v2091_v51 }
 0x1b3   : > { %2256 = vst [vmem:[%s3077_s0 + $0x18] sm:$0xff] %v2208_v43 }
 0x1b4   : > { %v1926_v7 = vpop.f32.mrf.mxu2 }
 0x1b5   : > { %v1960_v46 = vadd.f32 %v1926_v7, %v1850_v59  ;;  %v2058_v8 = vpop.f32.mrf.mxu3 }
 0x1b6   : > { %v1818_v42 = vpop.f32.mrf.mxu1 }
 0x1b7   : > { %v2092_v31 = vadd.f32 %v2058_v8, %v1960_v46  ;;  %v1851_v2 = vadd.f32 %v1818_v42, %v3472_v26 }
 0x1b8   : > { %v2177_v30 = vpop.f32.mrf.mxu0 }
 0x1b9   : > { %v2209_v12 = vadd.f32 %v2175_v1, %v2092_v31 }
 0x1bb   : > { %2257 = vst [vmem:[%s3077_s0 + $0x20] sm:$0xff] %v2209_v12 }
 0x1bc   : > { %v1928_v14 = vpop.f32.mrf.mxu2 }
 0x1bd   : > { %v1961_v48 = vadd.f32 %v1928_v14, %v1851_v2  ;;  %v2060_v4 = vpop.f32.mrf.mxu3 }
 0x1be   : > { %v1821_v5 = vpop.f32.mrf.mxu1 }
 0x1bf   : > { %v2093_v60 = vadd.f32 %v2060_v4, %v1961_v48  ;;  %v1852_v38 = vadd.f32 %v1821_v5, %v3480_v24 }
 0x1c0   : > { %v2180_v15 = vpop.f32.mrf.mxu0 }
 0x1c1   : > { %v2210_v18 = vadd.f32 %v2177_v30, %v2093_v60 }
 0x1c3   : > { %2258 = vst [vmem:[%s3077_s0 + $0x28] sm:$0xff] %v2210_v18 }
 0x1c4   : > { %v1931_v20 = vpop.f32.mrf.mxu2 }
 0x1c5   : > { %v1962_v21 = vadd.f32 %v1931_v20, %v1852_v38  ;;  %v2063_v0 = vpop.f32.mrf.mxu3 }
 0x1c6   : > { %v1823_v22 = vpop.f32.mrf.mxu1 }
 0x1c7   : > { %v2094_v16 = vadd.f32 %v2063_v0, %v1962_v21  ;;  %v1853_v26 = vadd.f32 %v1823_v22, %v3487_v6 }
 0x1c8   : > { %v2182_v54 = vpop.f32.mrf.mxu0 }
 0x1c9   : > { %v2211_v29 = vadd.f32 %v2180_v15, %v2094_v16 }
 0x1cb   : > { %2259 = vst [vmem:[%s3077_s0 + $0x30] sm:$0xff] %v2211_v29 }
 0x1cc   : > { %v1933_v57 = vpop.f32.mrf.mxu2 }
 0x1cd   : > { %v1963_v19 = vadd.f32 %v1933_v57, %v1853_v26  ;;  %v2065_v11 = vpop.f32.mrf.mxu3 }
 0x1ce   : > { %v1826_v3 = vpop.f32.mrf.mxu1 }
 0x1cf   : > { %v2095_v23 = vadd.f32 %v2065_v11, %v1963_v19  ;;  %v1854_v24 = vadd.f32 %v1826_v3, %v3494_v17 }
 0x1d0   : > { %v2185_v53 = vpop.f32.mrf.mxu0 }
 0x1d1   : > { %v2212_v32 = vadd.f32 %v2182_v54, %v2095_v23 }
 0x1d3   : > { %2260 = vst [vmem:[%s3077_s0 + $0x38] sm:$0xff] %v2212_v32 }
 0x1d4   : > { %v1936_v25 = vpop.f32.mrf.mxu2 }
 0x1d5   : > { %v1964_v44 = vadd.f32 %v1936_v25, %v1854_v24  ;;  %v2068_v56 = vpop.f32.mrf.mxu3 }
 0x1d6   : > { %v1828_v41 = vpop.f32.mrf.mxu1 }
 0x1d7   : > { %v2096_v49 = vadd.f32 %v2068_v56, %v1964_v44  ;;  %v1855_v6 = vadd.f32 %v1828_v41, %v3503_v62 }
 0x1d8   : > { %v2187_v39 = vpop.f32.mrf.mxu0 }
 0x1d9   : > { %v2213_v36 = vadd.f32 %v2185_v53, %v2096_v49 }
 0x1db   : > { %2261 = vst [vmem:[%s3077_s0 + $0x40] sm:$0xff] %v2213_v36 }
 0x1dc   : > { %v1938_v55 = vpop.f32.mrf.mxu2 }
 0x1dd   : > { %v1965_v52 = vadd.f32 %v1938_v55, %v1855_v6  ;;  %v2070_v28 = vpop.f32.mrf.mxu3 }
 0x1de   : > { %v1831_v61 = vpop.f32.mrf.mxu1 }
 0x1df   : > { %v2097_v40 = vadd.f32 %v2070_v28, %v1965_v52  ;;  %v1856_v17 = vadd.f32 %v1831_v61, %v3514_v10 }
 0x1e0   : > { %v2190_v34 = vpop.f32.mrf.mxu0 }
 0x1e1   : > { %v2214_v35 = vadd.f32 %v2187_v39, %v2097_v40 }
 0x1e3   : > { %2262 = vst [vmem:[%s3077_s0 + $0x48] sm:$0xff] %v2214_v35 }
 0x1e4   : > { %v1941_v13 = vpop.f32.mrf.mxu2 }
 0x1e5   : > { %v1966_v45 = vadd.f32 %v1941_v13, %v1856_v17  ;;  %v2073_v47 = vpop.f32.mrf.mxu3 }
 0x1e6   : > { %v1833_v27 = vpop.f32.mrf.mxu1 }
 0x1e7   : > { %v2098_v37 = vadd.f32 %v2073_v47, %v1966_v45  ;;  %v1857_v62 = vadd.f32 %v1833_v27, %v3521_v33 }
 0x1e8   : > { %v2192_v51 = vpop.f32.mrf.mxu0 }
 0x1e9   : > { %v2215_v1 = vadd.f32 %v2190_v34, %v2098_v37 }
 0x1eb   : > { %2263 = vst [vmem:[%s3077_s0 + $0x50] sm:$0xff] %v2215_v1 }
 0x1ec   : > { %v1943_v43 = vpop.f32.mrf.mxu2 }
 0x1ed   : > { %v1967_v59 = vadd.f32 %v1943_v43, %v1857_v62  ;;  %v2075_v7 = vpop.f32.mrf.mxu3 }
 0x1ee   : > { %v1836_v46 = vpop.f32.mrf.mxu1 }
 0x1ef   : > { %v2099_v8 = vadd.f32 %v2075_v7, %v1967_v59  ;;  %v1858_v10 = vadd.f32 %v1836_v46, %v3535_v63 }
 0x1f0   : > { %v2195_v31 = vpop.f32.mrf.mxu0 }
 0x1f1   : > { %v2216_v42 = vadd.f32 %v2192_v51, %v2099_v8 }
 0x1f3   : > { %2264 = vst [vmem:[%s3077_s0 + $0x58] sm:$0xff] %v2216_v42 }
 0x1f4   : > { %v1946_v30 = vpop.f32.mrf.mxu2 }
 0x1f5   : > { %v1968_v12 = vadd.f32 %v1946_v30, %v1858_v10  ;;  %v2078_v2 = vpop.f32.mrf.mxu3 }
 0x1f6   : > { %v1838_v14 = vpop.f32.mrf.mxu1 }
 0x1f7   : > { %v2100_v48 = vadd.f32 %v2078_v2, %v1968_v12  ;;  %v1859_v4 = vadd.f32 %v1838_v14, %v3540_v50 }
 0x1f8   : > { %v2197_v5 = vpop.f32.mrf.mxu0 }
 0x1f9   : > { %v2217_v33 = vadd.f32 %v2195_v31, %v2100_v48 }
 0x1fb   : > { %2265 = vst [vmem:[%s3077_s0 + $0x60] sm:$0xff] %v2217_v33 }
 0x1fc   : > { %v1948_v60 = vpop.f32.mrf.mxu2 }
 0x1fd   : > { %v1969_v15 = vadd.f32 %v1948_v60, %v1859_v4  ;;  %v2080_v18 = vpop.f32.mrf.mxu3 }
 0x1fe   : > { %v1841_v38 = vpop.f32.mrf.mxu1 }
 0x1ff   : > { %v2101_v20 = vadd.f32 %v2080_v18, %v1969_v15  ;;  %v1860_v21 = vadd.f32 %v1841_v38, %v3545_v58 }
 0x200   : > { %v2200_v54 = vpop.f32.mrf.mxu0 }
 0x201   : > { %v2218_v63 = vadd.f32 %v2197_v5, %v2101_v20 }
 0x203   : > { %2266 = vst [vmem:[%s3077_s0 + $0x68] sm:$0xff] %v2218_v63 }
 0x204   : > { %v1951_v0 = vpop.f32.mrf.mxu2 }
 0x205   : > { %v1970_v22 = vadd.f32 %v1951_v0, %v1860_v21  ;;  %v2083_v16 = vpop.f32.mrf.mxu3 }
 0x206   : > { %v1843_v29 = vpop.f32.mrf.mxu1 }
 0x207   : > { %v2102_v50 = vadd.f32 %v2083_v16, %v1970_v22  ;;  %v1861_v57 = vadd.f32 %v1843_v29, %v3547_v9 }
 0x208   : > { %v2202_v23 = vpop.f32.mrf.mxu0 }
 0x209   : > { %v2219_v26 = vadd.f32 %v2200_v54, %v2102_v50 }
 0x20b   : > { %2267 = vst [vmem:[%s3077_s0 + $0x70] sm:$0xff] %v2219_v26 }
 0x20c   : > { %v1953_v19 = vpop.f32.mrf.mxu2 }
 0x20d   : > { %v1971_v58 = vadd.f32 %v1953_v19, %v1861_v57  ;;  %v2085_v11 = vpop.f32.mrf.mxu3 }
 0x20f   : > { %v2103_v3 = vadd.f32 %v2085_v11, %v1971_v58 }
 0x211   : > { %v2220_v53 = vadd.f32 %v2202_v23, %v2103_v3 }
 0x213   : > { %2268 = vst [vmem:[%s3077_s0 + $0x78] sm:$0xff] %v2220_v53 }
 0x214   : > { %2711 = shalt.err (!%p2708_p13)
}
 0x215   : > { %s2781_s0 = smov 128   ;;  %s2782_s12 = smov 8  }
 0x216   : > { %2609 = dma.vmem_to_hbm [thread:$0]  (%p2864_p3), %s2286_s22, 2048, %s2288_s27, %s2270_s8, %s2781_s0, %s2781_s0, %s2782_s12  }
 0x217 PF: > { %p2615_p0 = scmp.ge.s32.totalorder %s2778_s25, 2  ;;  %s2302_s14 = sand.u32 1, %s2750_s18  }
 0x218   : > { %s2303_s21 = scalar_lea.sflag [#allocation5], %s2302_s14 }
 0x219   : > { %p2612_p1 = pnand %p2615_p0, %p2873_p8 }
 0x21b   : > { %p2613_p2 = pneg %p2612_p1 }
 0x21d   : > { %2745 = dma.done.wait (%p2613_p2), %s2303_s21, 2048  }
 0x21e   : > { %2747 = vsyncadd (%p2613_p2), %s2303_s21, 4294965248  ;;  %s18_s25 = sadd.s32 1, %s2778_s25   ;;  %s3650_s18 = smov %s2754_s19 }
 0x21f   : > { %p15_p4 = scmp.ge.s32.totalorder %s18_s25, 6   ;;  %s3651_s19 = smov %s2758_s20 }
 0x220   : > { %s3652_s20 = smov %s2882_s11  ;;  %s3653_s21 = smov %s2770_s23 }
 0x221   : > { %s3654_s22 = smov %s2774_s24  ;;  %s3655_s23 = smov %s3658_s28 }
 0x222   : > { %s3656_s24 = smov %s3662_s29  ;;  %17 = sbr.rel (!%p15_p4) target bundleno = 7 (0x7), region = 99 }
 0x227   :  { %2309 = vsyncpa [#allocation5], 1 }
 0x228   :  { %2311 = vsyncpa [#allocation5 + $0x1], 1 }

</bundles_post_ra>
